<compile_context>
chip_gen: v7x
topology: tpu7x:2x2x1
jax: 0.10.0
libtpu: 0.0.40
codegen_flags: <defaults>
</compile_context>

<pallas_src>
import functools

import jax
import jax.numpy as jnp
from jax.experimental import pallas as pl
from jax.experimental.pallas import tpu as pltpu

KERNEL_SIZES = (8, 5, 3)
BN_EPS = 1e-5


def _round_up(x: int, m: int) -> int:
    return (x + m - 1) // m * m


def _pick_batch_tile(B: int, L: int) -> int:
    """Pick TB so each per-tap matmul has TB*L rows (target >=256 to fill the MXU
    M-dim), while TB divides B (no batch padding needed)."""
    tb = max(1, min(B, -(-256 // L)))
    if L % 8 != 0:
        tb = 1          # keep the (TB, L) -> (TB*L,) sublane merge tile-aligned
    while B % tb != 0:  # step down to a divisor of B
        tb -= 1
    return tb


# --------------------------------------------------------------------------- #
# Kernel: one batch tile (TB elements) per grid step
# --------------------------------------------------------------------------- #
def _resnet_block_kernel(*refs, match_channels: bool):
    if match_channels:
        (x_ref, w1_ref, b1_ref, w2_ref, b2_ref, w3_ref, b3_ref, wr_ref, br_ref,
         o_ref, xpad_ref, pad2_ref, pad3_ref) = refs
    else:
        (x_ref, w1_ref, b1_ref, w2_ref, b2_ref, w3_ref, b3_ref,
         o_ref, xpad_ref, pad2_ref, pad3_ref) = refs
        wr_ref = br_ref = None

    tb, L, c_out = o_ref.shape
    c_in = x_ref.shape[-1]
    cin_p = xpad_ref.shape[-1]
    cout_p = b1_ref.shape[-1]
    M = tb * L

    def conv(src_ref, w_ref, b_ref, ksize):
        """Per-tap (M, C) x (C, cout_p) bf16 MXU matmuls, f32 accumulation."""
        src_c = src_ref.shape[-1]
        acc = jnp.zeros((M, cout_p), jnp.float32)
        for k in range(ksize):                              # static unroll over taps
            lhs = src_ref[:, pl.ds(k, L), :].reshape(M, src_c)
            acc = acc + jnp.dot(lhs.astype(jnp.bfloat16), w_ref[k],
                                preferred_element_type=jnp.float32)
        return acc + b_ref[...]

    # --- ConvBlock 1: k=8, "same" pad is asymmetric (3 left / 4 right). ---------
    # Channel padding (c_in -> cin_p) and the L-halo live only in VMEM; the zeroing
    # is tiny ((L+7)*cin_p per tile) and keeps the parallel batch axis safe.
    xpad_ref[...] = jnp.zeros_like(xpad_ref)
    xpad_ref[:, pl.ds(3, L), pl.ds(0, c_in)] = x_ref[...]
    h = jnp.maximum(conv(xpad_ref, w1_ref, b1_ref, 8), 0.0)

    # --- ConvBlock 2: k=5, symmetric pad 2/2 — zero only the halo rows. ---------
    pad2_ref[:, pl.ds(0, 2), :] = jnp.zeros((tb, 2, cout_p), jnp.float32)
    pad2_ref[:, pl.ds(2 + L, 2), :] = jnp.zeros((tb, 2, cout_p), jnp.float32)
    pad2_ref[:, pl.ds(2, L), :] = h.reshape(tb, L, cout_p)
    h = jnp.maximum(conv(pad2_ref, w2_ref, b2_ref, 5), 0.0)

    # --- ConvBlock 3: k=3, symmetric pad 1/1. -----------------------------------
    pad3_ref[:, pl.ds(0, 1), :] = jnp.zeros((tb, 1, cout_p), jnp.float32)
    pad3_ref[:, pl.ds(1 + L, 1), :] = jnp.zeros((tb, 1, cout_p), jnp.float32)
    pad3_ref[:, pl.ds(1, L), :] = h.reshape(tb, L, cout_p)
    h = jnp.maximum(conv(pad3_ref, w3_ref, b3_ref, 3), 0.0)

    # --- Residual: 1x1 conv + folded BN (no ReLU), only when channels differ. ---
    if match_channels:
        xres = xpad_ref[:, pl.ds(3, L), :].reshape(M, cin_p).astype(jnp.bfloat16)
        h = h + jnp.dot(xres, wr_ref[...],
                        preferred_element_type=jnp.float32) + br_ref[...]

    # Only the real output channels leave VMEM (masked store when c_out < 128).
    o_ref[...] = h[:, :c_out].reshape(tb, L, c_out).astype(o_ref.dtype)


# --------------------------------------------------------------------------- #
# Forward wrapper
# --------------------------------------------------------------------------- #
@functools.partial(jax.jit, static_argnames=("out_channels", "match_channels"))
def resnet_block_forward(x, prepared, *, out_channels: int, match_channels: bool):
    """x: (B, C_in, L) float32; returns (B, out_channels, L) float32."""
    B, c_in, L = x.shape
    w1 = prepared[0]
    cin_p, cout_p = int(w1.shape[1]), int(w1.shape[2])

    tb = _pick_batch_tile(B, L)
    num_tiles = B // tb

    # Channel-last, UN-padded in HBM: channel/halo padding happens in VMEM inside
    # the kernel (cuts input HBM traffic by cin_p/c_in and removes an XLA pad pass).
    xt = jnp.transpose(x, (0, 2, 1)).astype(jnp.float32)          # (B, L, c_in)

    kernel = functools.partial(_resnet_block_kernel, match_channels=match_channels)

    def _const(ndim):
        return lambda b: (0,) * ndim

    # Weights/biases use constant index maps -> stay VMEM-resident across steps.
    in_specs = [pl.BlockSpec((tb, L, c_in), lambda b: (b, 0, 0))]
    in_specs += [pl.BlockSpec(a.shape, _const(a.ndim)) for a in prepared]

    flops = 2 * B * L * (8 * cin_p * cout_p + (5 + 3) * cout_p * cout_p
                         + (cin_p * cout_p if match_channels else 0))
    bytes_accessed = (int(xt.size) * 4 + B * L * out_channels * 4
                      + sum(int(a.size) * a.dtype.itemsize for a in prepared))

    out = pl.pallas_call(
        kernel,
        out_shape=jax.ShapeDtypeStruct((B, L, out_channels), jnp.float32),
        grid=(num_tiles,),
        in_specs=in_specs,
        out_specs=pl.BlockSpec((tb, L, out_channels), lambda b: (b, 0, 0)),
        scratch_shapes=[
            pltpu.VMEM((tb, L + 7, cin_p), jnp.float32),   # layer-1 padded input
            pltpu.VMEM((tb, L + 4, cout_p), jnp.float32),  # layer-2 padded activation
            pltpu.VMEM((tb, L + 2, cout_p), jnp.float32),  # layer-3 padded activation
        ],
        compiler_params=pltpu.CompilerParams(dimension_semantics=("parallel",)),
        cost_estimate=pl.CostEstimate(flops=flops, transcendentals=0,
                                      bytes_accessed=bytes_accessed),
    )(xt, *prepared)

    return jnp.transpose(out, (0, 2, 1))                          # (B, C_out, L)


# --------------------------------------------------------------------------- #
# Parameters: PyTorch-like raw params + one-time preparation (BN fold + pack)
# --------------------------------------------------------------------------- #
def init_params(key, in_channels: int, out_channels: int):
    """Random PyTorch-like params: 3 ConvBlocks + optional residual 1x1 conv."""
    chans = [in_channels, out_channels, out_channels, out_channels]
    keys = jax.random.split(key, 4)

    def conv_bn(k, cin, cout, ksize):
        kw, kb, kg, kbeta, km, kv = jax.random.split(k, 6)
        bound = 1.0 / (cin * ksize) ** 0.5
        return dict(
            w=jax.random.uniform(kw, (cout, cin, ksize), jnp.float32, -bound, bound),
            b=jax.random.uniform(kb, (cout,), jnp.float32, -bound, bound),
            gamma=jax.random.uniform(kg, (cout,), jnp.float32, 0.5, 1.5),
            beta=jax.random.uniform(kbeta, (cout,), jnp.float32, -0.5, 0.5),
            mean=0.1 * jax.random.normal(km, (cout,), jnp.float32),
            var=jax.random.uniform(kv, (cout,), jnp.float32, 0.5, 1.5),
        )

    blocks = [conv_bn(keys[i], chans[i], chans[i + 1], KERNEL_SIZES[i])
              for i in range(len(KERNEL_SIZES))]
    residual = conv_bn(keys[3], in_channels, out_channels, 1) \
        if in_channels != out_channels else None
    return dict(blocks=blocks, residual=residual)


def _fold_bn(w, b, gamma, beta, mean, var, eps=BN_EPS):
    """Fold eval-mode BatchNorm1d into the preceding conv."""
    s = gamma / jnp.sqrt(var + eps)
    return w * s[:, None, None], (b - mean) * s + beta


def prepare_params(params):
    """ONE-TIME prep: fold BN, transpose weights to per-tap (K, Cin, Cout) matrices,
    pad the channel dims to 128 lanes, cast weights to bf16 (biases stay f32)."""
    blocks = params["blocks"]
    out_ch, in_ch, _ = blocks[0]["w"].shape
    cin_p = _round_up(in_ch, 128)
    cout_p = _round_up(out_ch, 128)

    packed = []
    for i, blk in enumerate(blocks):
        w_f, b_f = _fold_bn(blk["w"], blk["b"], blk["gamma"], blk["beta"],
                            blk["mean"], blk["var"])
        cout, cin, ksize = w_f.shape
        src_p = cin_p if i == 0 else cout_p
        wk = jnp.zeros((ksize, src_p, cout_p), jnp.float32)
        wk = wk.at[:, :cin, :cout].set(jnp.transpose(w_f, (2, 1, 0)))
        packed.append(wk.astype(jnp.bfloat16))
        packed.append(jnp.zeros((1, cout_p), jnp.float32).at[0, :cout].set(b_f))

    match_channels = params["residual"] is not None
    if match_channels:
        r = params["residual"]
        w_f, b_f = _fold_bn(r["w"], r["b"], r["gamma"], r["beta"], r["mean"], r["var"])
        wr = jnp.zeros((cin_p, cout_p), jnp.float32).at[:in_ch, :out_ch].set(w_f[:, :, 0].T)
        br = jnp.zeros((1, cout_p), jnp.float32).at[0, :out_ch].set(b_f)
        packed += [wr.astype(jnp.bfloat16), br]

    prepared = tuple(jax.device_put(a) for a in packed)
    return prepared, match_channels


# --------------------------------------------------------------------------- #
# Pure-JAX reference (mirrors PyTorch eval-mode forward)
# --------------------------------------------------------------------------- #
def _conv1d_same_padding_ref(x, w, b):
    """Mirrors conv1d_same_padding (stride=1, dilation=1). x: (B,C,L), w: (O,C,K)."""
    K = w.shape[2]
    pad_total = K - 1
    if pad_total % 2 != 0:
        x = jnp.pad(x, ((0, 0), (0, 0), (0, 1)))
    p = pad_total // 2
    xp = jnp.pad(x, ((0, 0), (0, 0), (p, p)))
    L_out = xp.shape[2] - K + 1
    cols = jnp.stack([xp[:, :, k:k + L_out] for k in range(K)], axis=-1)  # (B,C,L,K)
    return jnp.einsum("bclk,ock->bol", cols, w) + b[None, :, None]


def _bn_eval_ref(y, blk, eps=BN_EPS):
    inv = 1.0 / jnp.sqrt(blk["var"] + eps)
    return ((y - blk["mean"][None, :, None]) * inv[None, :, None]
            * blk["gamma"][None, :, None] + blk["beta"][None, :, None])


def reference_forward(x, params):
    x = x.astype(jnp.float32)
    h = x
    for blk in params["blocks"]:
        h = _conv1d_same_padding_ref(h, blk["w"], blk["b"])
        h = jnp.maximum(_bn_eval_ref(h, blk), 0.0)
    if params["residual"] is not None:
        r = params["residual"]
        h = h + _bn_eval_ref(_conv1d_same_padding_ref(x, r["w"], r["b"]), r)
    return h


if __name__ == "__main__":
    key = jax.random.PRNGKey(0)
    k_x, k_p = jax.random.split(key)

    # Small shapes: batch=2, in_channels=4, out_channels=8, seq_len=16.
    B, C_IN, C_OUT, L = 2, 4, 8, 16
    x = jax.random.normal(k_x, (B, C_IN, L), jnp.float32)
    params = init_params(k_p, C_IN, C_OUT)

    # One-time parameter prep (BN folding + bf16 + TPU-tile padding), outside the hot path.
    prepared, match_channels = prepare_params(params)

    out = resnet_block_forward(x, prepared, out_channels=C_OUT,
                               match_channels=match_channels)
    out = jax.block_until_ready(out)

    ref = reference_forward(x, params)
    assert out.shape == (B, C_OUT, L), out.shape
    max_err = float(jnp.max(jnp.abs(out - ref)))
    # bf16 MXU operands (with f32 accumulation) -> looser tolerance vs f32 reference.
    assert jnp.allclose(out, ref, atol=5e-2, rtol=5e-2), f"max_abs_err={max_err}"

    print("KERNEL_OK")
</pallas_src>

<mosaic_0001>
module attributes {stable_mosaic.version = 11 : i64} {
  func.func @_resnet_block_kernel(%arg0: i32, %arg1: memref<2x16x4xf32, #tpu.memory_space<vmem>>, %arg2: memref<8x128x128xbf16, #tpu.memory_space<vmem>>, %arg3: memref<1x128xf32, #tpu.memory_space<vmem>>, %arg4: memref<5x128x128xbf16, #tpu.memory_space<vmem>>, %arg5: memref<1x128xf32, #tpu.memory_space<vmem>>, %arg6: memref<3x128x128xbf16, #tpu.memory_space<vmem>>, %arg7: memref<1x128xf32, #tpu.memory_space<vmem>>, %arg8: memref<128x128xbf16, #tpu.memory_space<vmem>>, %arg9: memref<1x128xf32, #tpu.memory_space<vmem>>, %arg10: memref<2x16x8xf32, #tpu.memory_space<vmem>>, %arg11: memref<2x23x128xf32, #tpu.memory_space<vmem>>, %arg12: memref<2x20x128xf32, #tpu.memory_space<vmem>>, %arg13: memref<2x18x128xf32, #tpu.memory_space<vmem>>) attributes {dimension_semantics = [#tpu.dimension_semantics<parallel>], iteration_bounds = array<i64: 1>, scalar_prefetch = 0 : i64, scratch_operands = 3 : i64, tpu.core_type = #tpu.core_type<tc>, window_params = [{transform_indices = @transform_0, window_bounds = array<i64: 2, 16, 4>}, {pipeline_mode = #tpu.pipeline_mode<synchronous>, transform_indices = @transform_1, window_bounds = array<i64: 8, 128, 128>}, {pipeline_mode = #tpu.pipeline_mode<synchronous>, transform_indices = @transform_2, window_bounds = array<i64: 1, 128>}, {pipeline_mode = #tpu.pipeline_mode<synchronous>, transform_indices = @transform_3, window_bounds = array<i64: 5, 128, 128>}, {pipeline_mode = #tpu.pipeline_mode<synchronous>, transform_indices = @transform_4, window_bounds = array<i64: 1, 128>}, {pipeline_mode = #tpu.pipeline_mode<synchronous>, transform_indices = @transform_5, window_bounds = array<i64: 3, 128, 128>}, {pipeline_mode = #tpu.pipeline_mode<synchronous>, transform_indices = @transform_6, window_bounds = array<i64: 1, 128>}, {pipeline_mode = #tpu.pipeline_mode<synchronous>, transform_indices = @transform_7, window_bounds = array<i64: 128, 128>}, {pipeline_mode = #tpu.pipeline_mode<synchronous>, transform_indices = @transform_8, window_bounds = array<i64: 1, 128>}, {transform_indices = @transform_9, window_bounds = array<i64: 2, 16, 8>}]} {
    %cst = arith.constant 0.000000e+00 : f32
    %0 = vector.broadcast %cst : f32 to vector<2x23x128xf32>
    %c0 = arith.constant 0 : index
    %c0_0 = arith.constant 0 : index
    %c0_1 = arith.constant 0 : index
    %1 = vector.load %arg11[%c0, %c0_0, %c0_1] : memref<2x23x128xf32, #tpu.memory_space<vmem>>, vector<2x23x128xf32>
    tpu.vector_store %arg11[%c0, %c0_0, %c0_1], %0 {strides = array<i32>} : memref<2x23x128xf32, #tpu.memory_space<vmem>>, vector<2x23x128xf32>,
    %c0_2 = arith.constant 0 : index
    %c0_3 = arith.constant 0 : index
    %c0_4 = arith.constant 0 : index
    %2 = vector.load %arg1[%c0_2, %c0_3, %c0_4] : memref<2x16x4xf32, #tpu.memory_space<vmem>>, vector<2x16x4xf32>
    %c0_5 = arith.constant 0 : index
    %c3 = arith.constant 3 : index
    %c0_6 = arith.constant 0 : index
    %3 = vector.load %arg11[%c0_5, %c3, %c0_6] : memref<2x23x128xf32, #tpu.memory_space<vmem>>, vector<2x16x4xf32>
    tpu.vector_store %arg11[%c0_5, %c3, %c0_6], %2 {strides = array<i32>} : memref<2x23x128xf32, #tpu.memory_space<vmem>>, vector<2x16x4xf32>,
    %cst_7 = arith.constant 0.000000e+00 : f32
    %4 = vector.broadcast %cst_7 : f32 to vector<32x128xf32>
    %c0_8 = arith.constant 0 : index
    %c0_9 = arith.constant 0 : index
    %c0_10 = arith.constant 0 : index
    %5 = vector.load %arg11[%c0_8, %c0_9, %c0_10] : memref<2x23x128xf32, #tpu.memory_space<vmem>>, vector<2x16x128xf32>
    %6 = vector.shape_cast %5 : vector<2x16x128xf32> to vector<32x128xf32>
    %7 = arith.truncf %6 : vector<32x128xf32> to vector<32x128xbf16>
    %c0_11 = arith.constant 0 : index
    %c0_12 = arith.constant 0 : index
    %c0_13 = arith.constant 0 : index
    %8 = vector.load %arg2[%c0_11, %c0_12, %c0_13] : memref<8x128x128xbf16, #tpu.memory_space<vmem>>, vector<1x128x128xbf16>
    %9 = vector.shape_cast %8 : vector<1x128x128xbf16> to vector<128x128xbf16>
    %cst_14 = arith.constant dense<0.000000e+00> : vector<32x128xf32>
    %10 = tpu.matmul %7, %9, %cst_14 {dimension_numbers = #tpu.dot_dimension_numbers<[1], [0], [0], [1], [0, 0, 1, 1], [], []>} : vector<32x128xbf16>, vector<128x128xbf16>, vector<32x128xf32> -> vector<32x128xf32>
    %11 = arith.addf %4, %10 : vector<32x128xf32>
    %c0_15 = arith.constant 0 : index
    %c1 = arith.constant 1 : index
    %c0_16 = arith.constant 0 : index
    %12 = vector.load %arg11[%c0_15, %c1, %c0_16] : memref<2x23x128xf32, #tpu.memory_space<vmem>>, vector<2x16x128xf32>
    %13 = vector.shape_cast %12 : vector<2x16x128xf32> to vector<32x128xf32>
    %14 = arith.truncf %13 : vector<32x128xf32> to vector<32x128xbf16>
    %c1_17 = arith.constant 1 : index
    %c0_18 = arith.constant 0 : index
    %c0_19 = arith.constant 0 : index
    %15 = vector.load %arg2[%c1_17, %c0_18, %c0_19] : memref<8x128x128xbf16, #tpu.memory_space<vmem>>, vector<1x128x128xbf16>
    %16 = vector.shape_cast %15 : vector<1x128x128xbf16> to vector<128x128xbf16>
    %cst_20 = arith.constant dense<0.000000e+00> : vector<32x128xf32>
    %17 = tpu.matmul %14, %16, %cst_20 {dimension_numbers = #tpu.dot_dimension_numbers<[1], [0], [0], [1], [0, 0, 1, 1], [], []>} : vector<32x128xbf16>, vector<128x128xbf16>, vector<32x128xf32> -> vector<32x128xf32>
    %18 = arith.addf %11, %17 : vector<32x128xf32>
    %c0_21 = arith.constant 0 : index
    %c2 = arith.constant 2 : index
    %c0_22 = arith.constant 0 : index
    %19 = vector.load %arg11[%c0_21, %c2, %c0_22] : memref<2x23x128xf32, #tpu.memory_space<vmem>>, vector<2x16x128xf32>
    %20 = vector.shape_cast %19 : vector<2x16x128xf32> to vector<32x128xf32>
    %21 = arith.truncf %20 : vector<32x128xf32> to vector<32x128xbf16>
    %c2_23 = arith.constant 2 : index
    %c0_24 = arith.constant 0 : index
    %c0_25 = arith.constant 0 : index
    %22 = vector.load %arg2[%c2_23, %c0_24, %c0_25] : memref<8x128x128xbf16, #tpu.memory_space<vmem>>, vector<1x128x128xbf16>
    %23 = vector.shape_cast %22 : vector<1x128x128xbf16> to vector<128x128xbf16>
    %cst_26 = arith.constant dense<0.000000e+00> : vector<32x128xf32>
    %24 = tpu.matmul %21, %23, %cst_26 {dimension_numbers = #tpu.dot_dimension_numbers<[1], [0], [0], [1], [0, 0, 1, 1], [], []>} : vector<32x128xbf16>, vector<128x128xbf16>, vector<32x128xf32> -> vector<32x128xf32>
    %25 = arith.addf %18, %24 : vector<32x128xf32>
    %c0_27 = arith.constant 0 : index
    %c3_28 = arith.constant 3 : index
    %c0_29 = arith.constant 0 : index
    %26 = vector.load %arg11[%c0_27, %c3_28, %c0_29] : memref<2x23x128xf32, #tpu.memory_space<vmem>>, vector<2x16x128xf32>
    %27 = vector.shape_cast %26 : vector<2x16x128xf32> to vector<32x128xf32>
    %28 = arith.truncf %27 : vector<32x128xf32> to vector<32x128xbf16>
    %c3_30 = arith.constant 3 : index
    %c0_31 = arith.constant 0 : index
    %c0_32 = arith.constant 0 : index
    %29 = vector.load %arg2[%c3_30, %c0_31, %c0_32] : memref<8x128x128xbf16, #tpu.memory_space<vmem>>, vector<1x128x128xbf16>
    %30 = vector.shape_cast %29 : vector<1x128x128xbf16> to vector<128x128xbf16>
    %cst_33 = arith.constant dense<0.000000e+00> : vector<32x128xf32>
    %31 = tpu.matmul %28, %30, %cst_33 {dimension_numbers = #tpu.dot_dimension_numbers<[1], [0], [0], [1], [0, 0, 1, 1], [], []>} : vector<32x128xbf16>, vector<128x128xbf16>, vector<32x128xf32> -> vector<32x128xf32>
    %32 = arith.addf %25, %31 : vector<32x128xf32>
    %c0_34 = arith.constant 0 : index
    %c4 = arith.constant 4 : index
    %c0_35 = arith.constant 0 : index
    %33 = vector.load %arg11[%c0_34, %c4, %c0_35] : memref<2x23x128xf32, #tpu.memory_space<vmem>>, vector<2x16x128xf32>
    %34 = vector.shape_cast %33 : vector<2x16x128xf32> to vector<32x128xf32>
    %35 = arith.truncf %34 : vector<32x128xf32> to vector<32x128xbf16>
    %c4_36 = arith.constant 4 : index
    %c0_37 = arith.constant 0 : index
    %c0_38 = arith.constant 0 : index
    %36 = vector.load %arg2[%c4_36, %c0_37, %c0_38] : memref<8x128x128xbf16, #tpu.memory_space<vmem>>, vector<1x128x128xbf16>
    %37 = vector.shape_cast %36 : vector<1x128x128xbf16> to vector<128x128xbf16>
    %cst_39 = arith.constant dense<0.000000e+00> : vector<32x128xf32>
    %38 = tpu.matmul %35, %37, %cst_39 {dimension_numbers = #tpu.dot_dimension_numbers<[1], [0], [0], [1], [0, 0, 1, 1], [], []>} : vector<32x128xbf16>, vector<128x128xbf16>, vector<32x128xf32> -> vector<32x128xf32>
    %39 = arith.addf %32, %38 : vector<32x128xf32>
    %c0_40 = arith.constant 0 : index
    %c5 = arith.constant 5 : index
    %c0_41 = arith.constant 0 : index
    %40 = vector.load %arg11[%c0_40, %c5, %c0_41] : memref<2x23x128xf32, #tpu.memory_space<vmem>>, vector<2x16x128xf32>
    %41 = vector.shape_cast %40 : vector<2x16x128xf32> to vector<32x128xf32>
    %42 = arith.truncf %41 : vector<32x128xf32> to vector<32x128xbf16>
    %c5_42 = arith.constant 5 : index
    %c0_43 = arith.constant 0 : index
    %c0_44 = arith.constant 0 : index
    %43 = vector.load %arg2[%c5_42, %c0_43, %c0_44] : memref<8x128x128xbf16, #tpu.memory_space<vmem>>, vector<1x128x128xbf16>
    %44 = vector.shape_cast %43 : vector<1x128x128xbf16> to vector<128x128xbf16>
    %cst_45 = arith.constant dense<0.000000e+00> : vector<32x128xf32>
    %45 = tpu.matmul %42, %44, %cst_45 {dimension_numbers = #tpu.dot_dimension_numbers<[1], [0], [0], [1], [0, 0, 1, 1], [], []>} : vector<32x128xbf16>, vector<128x128xbf16>, vector<32x128xf32> -> vector<32x128xf32>
    %46 = arith.addf %39, %45 : vector<32x128xf32>
    %c0_46 = arith.constant 0 : index
    %c6 = arith.constant 6 : index
    %c0_47 = arith.constant 0 : index
    %47 = vector.load %arg11[%c0_46, %c6, %c0_47] : memref<2x23x128xf32, #tpu.memory_space<vmem>>, vector<2x16x128xf32>
    %48 = vector.shape_cast %47 : vector<2x16x128xf32> to vector<32x128xf32>
    %49 = arith.truncf %48 : vector<32x128xf32> to vector<32x128xbf16>
    %c6_48 = arith.constant 6 : index
    %c0_49 = arith.constant 0 : index
    %c0_50 = arith.constant 0 : index
    %50 = vector.load %arg2[%c6_48, %c0_49, %c0_50] : memref<8x128x128xbf16, #tpu.memory_space<vmem>>, vector<1x128x128xbf16>
    %51 = vector.shape_cast %50 : vector<1x128x128xbf16> to vector<128x128xbf16>
    %cst_51 = arith.constant dense<0.000000e+00> : vector<32x128xf32>
    %52 = tpu.matmul %49, %51, %cst_51 {dimension_numbers = #tpu.dot_dimension_numbers<[1], [0], [0], [1], [0, 0, 1, 1], [], []>} : vector<32x128xbf16>, vector<128x128xbf16>, vector<32x128xf32> -> vector<32x128xf32>
    %53 = arith.addf %46, %52 : vector<32x128xf32>
    %c0_52 = arith.constant 0 : index
    %c7 = arith.constant 7 : index
    %c0_53 = arith.constant 0 : index
    %54 = vector.load %arg11[%c0_52, %c7, %c0_53] : memref<2x23x128xf32, #tpu.memory_space<vmem>>, vector<2x16x128xf32>
    %55 = vector.shape_cast %54 : vector<2x16x128xf32> to vector<32x128xf32>
    %56 = arith.truncf %55 : vector<32x128xf32> to vector<32x128xbf16>
    %c7_54 = arith.constant 7 : index
    %c0_55 = arith.constant 0 : index
    %c0_56 = arith.constant 0 : index
    %57 = vector.load %arg2[%c7_54, %c0_55, %c0_56] : memref<8x128x128xbf16, #tpu.memory_space<vmem>>, vector<1x128x128xbf16>
    %58 = vector.shape_cast %57 : vector<1x128x128xbf16> to vector<128x128xbf16>
    %cst_57 = arith.constant dense<0.000000e+00> : vector<32x128xf32>
    %59 = tpu.matmul %56, %58, %cst_57 {dimension_numbers = #tpu.dot_dimension_numbers<[1], [0], [0], [1], [0, 0, 1, 1], [], []>} : vector<32x128xbf16>, vector<128x128xbf16>, vector<32x128xf32> -> vector<32x128xf32>
    %60 = arith.addf %53, %59 : vector<32x128xf32>
    %c0_58 = arith.constant 0 : index
    %c0_59 = arith.constant 0 : index
    %61 = vector.load %arg3[%c0_58, %c0_59] : memref<1x128xf32, #tpu.memory_space<vmem>>, vector<1x128xf32>
    %62 = vector.broadcast %61 : vector<1x128xf32> to vector<32x128xf32>
    %63 = arith.addf %60, %62 : vector<32x128xf32>
    %cst_60 = arith.constant 0.000000e+00 : f32
    %64 = vector.broadcast %cst_60 : f32 to vector<32x128xf32>
    %65 = arith.maximumf %63, %64 : vector<32x128xf32>
    %cst_61 = arith.constant 0.000000e+00 : f32
    %66 = vector.broadcast %cst_61 : f32 to vector<2x2x128xf32>
    %c0_62 = arith.constant 0 : index
    %c0_63 = arith.constant 0 : index
    %c0_64 = arith.constant 0 : index
    %67 = vector.load %arg12[%c0_62, %c0_63, %c0_64] : memref<2x20x128xf32, #tpu.memory_space<vmem>>, vector<2x2x128xf32>
    tpu.vector_store %arg12[%c0_62, %c0_63, %c0_64], %66 {strides = array<i32>} : memref<2x20x128xf32, #tpu.memory_space<vmem>>, vector<2x2x128xf32>,
    %cst_65 = arith.constant 0.000000e+00 : f32
    %68 = vector.broadcast %cst_65 : f32 to vector<2x2x128xf32>
    %c0_66 = arith.constant 0 : index
    %c18 = arith.constant 18 : index
    %c0_67 = arith.constant 0 : index
    %69 = vector.load %arg12[%c0_66, %c18, %c0_67] : memref<2x20x128xf32, #tpu.memory_space<vmem>>, vector<2x2x128xf32>
    tpu.vector_store %arg12[%c0_66, %c18, %c0_67], %68 {strides = array<i32>} : memref<2x20x128xf32, #tpu.memory_space<vmem>>, vector<2x2x128xf32>,
    %70 = vector.shape_cast %65 : vector<32x128xf32> to vector<2x16x128xf32>
    %c0_68 = arith.constant 0 : index
    %c2_69 = arith.constant 2 : index
    %c0_70 = arith.constant 0 : index
    %71 = vector.load %arg12[%c0_68, %c2_69, %c0_70] : memref<2x20x128xf32, #tpu.memory_space<vmem>>, vector<2x16x128xf32>
    tpu.vector_store %arg12[%c0_68, %c2_69, %c0_70], %70 {strides = array<i32>} : memref<2x20x128xf32, #tpu.memory_space<vmem>>, vector<2x16x128xf32>,
    %cst_71 = arith.constant 0.000000e+00 : f32
    %72 = vector.broadcast %cst_71 : f32 to vector<32x128xf32>
    %c0_72 = arith.constant 0 : index
    %c0_73 = arith.constant 0 : index
    %c0_74 = arith.constant 0 : index
    %73 = vector.load %arg12[%c0_72, %c0_73, %c0_74] : memref<2x20x128xf32, #tpu.memory_space<vmem>>, vector<2x16x128xf32>
    %74 = vector.shape_cast %73 : vector<2x16x128xf32> to vector<32x128xf32>
    %75 = arith.truncf %74 : vector<32x128xf32> to vector<32x128xbf16>
    %c0_75 = arith.constant 0 : index
    %c0_76 = arith.constant 0 : index
    %c0_77 = arith.constant 0 : index
    %76 = vector.load %arg4[%c0_75, %c0_76, %c0_77] : memref<5x128x128xbf16, #tpu.memory_space<vmem>>, vector<1x128x128xbf16>
    %77 = vector.shape_cast %76 : vector<1x128x128xbf16> to vector<128x128xbf16>
    %cst_78 = arith.constant dense<0.000000e+00> : vector<32x128xf32>
    %78 = tpu.matmul %75, %77, %cst_78 {dimension_numbers = #tpu.dot_dimension_numbers<[1], [0], [0], [1], [0, 0, 1, 1], [], []>} : vector<32x128xbf16>, vector<128x128xbf16>, vector<32x128xf32> -> vector<32x128xf32>
    %79 = arith.addf %72, %78 : vector<32x128xf32>
    %c0_79 = arith.constant 0 : index
    %c1_80 = arith.constant 1 : index
    %c0_81 = arith.constant 0 : index
    %80 = vector.load %arg12[%c0_79, %c1_80, %c0_81] : memref<2x20x128xf32, #tpu.memory_space<vmem>>, vector<2x16x128xf32>
    %81 = vector.shape_cast %80 : vector<2x16x128xf32> to vector<32x128xf32>
    %82 = arith.truncf %81 : vector<32x128xf32> to vector<32x128xbf16>
    %c1_82 = arith.constant 1 : index
    %c0_83 = arith.constant 0 : index
    %c0_84 = arith.constant 0 : index
    %83 = vector.load %arg4[%c1_82, %c0_83, %c0_84] : memref<5x128x128xbf16, #tpu.memory_space<vmem>>, vector<1x128x128xbf16>
    %84 = vector.shape_cast %83 : vector<1x128x128xbf16> to vector<128x128xbf16>
    %cst_85 = arith.constant dense<0.000000e+00> : vector<32x128xf32>
    %85 = tpu.matmul %82, %84, %cst_85 {dimension_numbers = #tpu.dot_dimension_numbers<[1], [0], [0], [1], [0, 0, 1, 1], [], []>} : vector<32x128xbf16>, vector<128x128xbf16>, vector<32x128xf32> -> vector<32x128xf32>
    %86 = arith.addf %79, %85 : vector<32x128xf32>
    %c0_86 = arith.constant 0 : index
    %c2_87 = arith.constant 2 : index
    %c0_88 = arith.constant 0 : index
    %87 = vector.load %arg12[%c0_86, %c2_87, %c0_88] : memref<2x20x128xf32, #tpu.memory_space<vmem>>, vector<2x16x128xf32>
    %88 = vector.shape_cast %87 : vector<2x16x128xf32> to vector<32x128xf32>
    %89 = arith.truncf %88 : vector<32x128xf32> to vector<32x128xbf16>
    %c2_89 = arith.constant 2 : index
    %c0_90 = arith.constant 0 : index
    %c0_91 = arith.constant 0 : index
    %90 = vector.load %arg4[%c2_89, %c0_90, %c0_91] : memref<5x128x128xbf16, #tpu.memory_space<vmem>>, vector<1x128x128xbf16>
    %91 = vector.shape_cast %90 : vector<1x128x128xbf16> to vector<128x128xbf16>
    %cst_92 = arith.constant dense<0.000000e+00> : vector<32x128xf32>
    %92 = tpu.matmul %89, %91, %cst_92 {dimension_numbers = #tpu.dot_dimension_numbers<[1], [0], [0], [1], [0, 0, 1, 1], [], []>} : vector<32x128xbf16>, vector<128x128xbf16>, vector<32x128xf32> -> vector<32x128xf32>
    %93 = arith.addf %86, %92 : vector<32x128xf32>
    %c0_93 = arith.constant 0 : index
    %c3_94 = arith.constant 3 : index
    %c0_95 = arith.constant 0 : index
    %94 = vector.load %arg12[%c0_93, %c3_94, %c0_95] : memref<2x20x128xf32, #tpu.memory_space<vmem>>, vector<2x16x128xf32>
    %95 = vector.shape_cast %94 : vector<2x16x128xf32> to vector<32x128xf32>
    %96 = arith.truncf %95 : vector<32x128xf32> to vector<32x128xbf16>
    %c3_96 = arith.constant 3 : index
    %c0_97 = arith.constant 0 : index
    %c0_98 = arith.constant 0 : index
    %97 = vector.load %arg4[%c3_96, %c0_97, %c0_98] : memref<5x128x128xbf16, #tpu.memory_space<vmem>>, vector<1x128x128xbf16>
    %98 = vector.shape_cast %97 : vector<1x128x128xbf16> to vector<128x128xbf16>
    %cst_99 = arith.constant dense<0.000000e+00> : vector<32x128xf32>
    %99 = tpu.matmul %96, %98, %cst_99 {dimension_numbers = #tpu.dot_dimension_numbers<[1], [0], [0], [1], [0, 0, 1, 1], [], []>} : vector<32x128xbf16>, vector<128x128xbf16>, vector<32x128xf32> -> vector<32x128xf32>
    %100 = arith.addf %93, %99 : vector<32x128xf32>
    %c0_100 = arith.constant 0 : index
    %c4_101 = arith.constant 4 : index
    %c0_102 = arith.constant 0 : index
    %101 = vector.load %arg12[%c0_100, %c4_101, %c0_102] : memref<2x20x128xf32, #tpu.memory_space<vmem>>, vector<2x16x128xf32>
    %102 = vector.shape_cast %101 : vector<2x16x128xf32> to vector<32x128xf32>
    %103 = arith.truncf %102 : vector<32x128xf32> to vector<32x128xbf16>
    %c4_103 = arith.constant 4 : index
    %c0_104 = arith.constant 0 : index
    %c0_105 = arith.constant 0 : index
    %104 = vector.load %arg4[%c4_103, %c0_104, %c0_105] : memref<5x128x128xbf16, #tpu.memory_space<vmem>>, vector<1x128x128xbf16>
    %105 = vector.shape_cast %104 : vector<1x128x128xbf16> to vector<128x128xbf16>
    %cst_106 = arith.constant dense<0.000000e+00> : vector<32x128xf32>
    %106 = tpu.matmul %103, %105, %cst_106 {dimension_numbers = #tpu.dot_dimension_numbers<[1], [0], [0], [1], [0, 0, 1, 1], [], []>} : vector<32x128xbf16>, vector<128x128xbf16>, vector<32x128xf32> -> vector<32x128xf32>
    %107 = arith.addf %100, %106 : vector<32x128xf32>
    %c0_107 = arith.constant 0 : index
    %c0_108 = arith.constant 0 : index
    %108 = vector.load %arg5[%c0_107, %c0_108] : memref<1x128xf32, #tpu.memory_space<vmem>>, vector<1x128xf32>
    %109 = vector.broadcast %108 : vector<1x128xf32> to vector<32x128xf32>
    %110 = arith.addf %107, %109 : vector<32x128xf32>
    %cst_109 = arith.constant 0.000000e+00 : f32
    %111 = vector.broadcast %cst_109 : f32 to vector<32x128xf32>
    %112 = arith.maximumf %110, %111 : vector<32x128xf32>
    %cst_110 = arith.constant 0.000000e+00 : f32
    %113 = vector.broadcast %cst_110 : f32 to vector<2x1x128xf32>
    %c0_111 = arith.constant 0 : index
    %c0_112 = arith.constant 0 : index
    %c0_113 = arith.constant 0 : index
    %114 = vector.load %arg13[%c0_111, %c0_112, %c0_113] : memref<2x18x128xf32, #tpu.memory_space<vmem>>, vector<2x1x128xf32>
    tpu.vector_store %arg13[%c0_111, %c0_112, %c0_113], %113 {strides = array<i32>} : memref<2x18x128xf32, #tpu.memory_space<vmem>>, vector<2x1x128xf32>,
    %cst_114 = arith.constant 0.000000e+00 : f32
    %115 = vector.broadcast %cst_114 : f32 to vector<2x1x128xf32>
    %c0_115 = arith.constant 0 : index
    %c17 = arith.constant 17 : index
    %c0_116 = arith.constant 0 : index
    %116 = vector.load %arg13[%c0_115, %c17, %c0_116] : memref<2x18x128xf32, #tpu.memory_space<vmem>>, vector<2x1x128xf32>
    tpu.vector_store %arg13[%c0_115, %c17, %c0_116], %115 {strides = array<i32>} : memref<2x18x128xf32, #tpu.memory_space<vmem>>, vector<2x1x128xf32>,
    %117 = vector.shape_cast %112 : vector<32x128xf32> to vector<2x16x128xf32>
    %c0_117 = arith.constant 0 : index
    %c1_118 = arith.constant 1 : index
    %c0_119 = arith.constant 0 : index
    %118 = vector.load %arg13[%c0_117, %c1_118, %c0_119] : memref<2x18x128xf32, #tpu.memory_space<vmem>>, vector<2x16x128xf32>
    tpu.vector_store %arg13[%c0_117, %c1_118, %c0_119], %117 {strides = array<i32>} : memref<2x18x128xf32, #tpu.memory_space<vmem>>, vector<2x16x128xf32>,
    %cst_120 = arith.constant 0.000000e+00 : f32
    %119 = vector.broadcast %cst_120 : f32 to vector<32x128xf32>
    %c0_121 = arith.constant 0 : index
    %c0_122 = arith.constant 0 : index
    %c0_123 = arith.constant 0 : index
    %120 = vector.load %arg13[%c0_121, %c0_122, %c0_123] : memref<2x18x128xf32, #tpu.memory_space<vmem>>, vector<2x16x128xf32>
    %121 = vector.shape_cast %120 : vector<2x16x128xf32> to vector<32x128xf32>
    %122 = arith.truncf %121 : vector<32x128xf32> to vector<32x128xbf16>
    %c0_124 = arith.constant 0 : index
    %c0_125 = arith.constant 0 : index
    %c0_126 = arith.constant 0 : index
    %123 = vector.load %arg6[%c0_124, %c0_125, %c0_126] : memref<3x128x128xbf16, #tpu.memory_space<vmem>>, vector<1x128x128xbf16>
    %124 = vector.shape_cast %123 : vector<1x128x128xbf16> to vector<128x128xbf16>
    %cst_127 = arith.constant dense<0.000000e+00> : vector<32x128xf32>
    %125 = tpu.matmul %122, %124, %cst_127 {dimension_numbers = #tpu.dot_dimension_numbers<[1], [0], [0], [1], [0, 0, 1, 1], [], []>} : vector<32x128xbf16>, vector<128x128xbf16>, vector<32x128xf32> -> vector<32x128xf32>
    %126 = arith.addf %119, %125 : vector<32x128xf32>
    %c0_128 = arith.constant 0 : index
    %c1_129 = arith.constant 1 : index
    %c0_130 = arith.constant 0 : index
    %127 = vector.load %arg13[%c0_128, %c1_129, %c0_130] : memref<2x18x128xf32, #tpu.memory_space<vmem>>, vector<2x16x128xf32>
    %128 = vector.shape_cast %127 : vector<2x16x128xf32> to vector<32x128xf32>
    %129 = arith.truncf %128 : vector<32x128xf32> to vector<32x128xbf16>
    %c1_131 = arith.constant 1 : index
    %c0_132 = arith.constant 0 : index
    %c0_133 = arith.constant 0 : index
    %130 = vector.load %arg6[%c1_131, %c0_132, %c0_133] : memref<3x128x128xbf16, #tpu.memory_space<vmem>>, vector<1x128x128xbf16>
    %131 = vector.shape_cast %130 : vector<1x128x128xbf16> to vector<128x128xbf16>
    %cst_134 = arith.constant dense<0.000000e+00> : vector<32x128xf32>
    %132 = tpu.matmul %129, %131, %cst_134 {dimension_numbers = #tpu.dot_dimension_numbers<[1], [0], [0], [1], [0, 0, 1, 1], [], []>} : vector<32x128xbf16>, vector<128x128xbf16>, vector<32x128xf32> -> vector<32x128xf32>
    %133 = arith.addf %126, %132 : vector<32x128xf32>
    %c0_135 = arith.constant 0 : index
    %c2_136 = arith.constant 2 : index
    %c0_137 = arith.constant 0 : index
    %134 = vector.load %arg13[%c0_135, %c2_136, %c0_137] : memref<2x18x128xf32, #tpu.memory_space<vmem>>, vector<2x16x128xf32>
    %135 = vector.shape_cast %134 : vector<2x16x128xf32> to vector<32x128xf32>
    %136 = arith.truncf %135 : vector<32x128xf32> to vector<32x128xbf16>
    %c2_138 = arith.constant 2 : index
    %c0_139 = arith.constant 0 : index
    %c0_140 = arith.constant 0 : index
    %137 = vector.load %arg6[%c2_138, %c0_139, %c0_140] : memref<3x128x128xbf16, #tpu.memory_space<vmem>>, vector<1x128x128xbf16>
    %138 = vector.shape_cast %137 : vector<1x128x128xbf16> to vector<128x128xbf16>
    %cst_141 = arith.constant dense<0.000000e+00> : vector<32x128xf32>
    %139 = tpu.matmul %136, %138, %cst_141 {dimension_numbers = #tpu.dot_dimension_numbers<[1], [0], [0], [1], [0, 0, 1, 1], [], []>} : vector<32x128xbf16>, vector<128x128xbf16>, vector<32x128xf32> -> vector<32x128xf32>
    %140 = arith.addf %133, %139 : vector<32x128xf32>
    %c0_142 = arith.constant 0 : index
    %c0_143 = arith.constant 0 : index
    %141 = vector.load %arg7[%c0_142, %c0_143] : memref<1x128xf32, #tpu.memory_space<vmem>>, vector<1x128xf32>
    %142 = vector.broadcast %141 : vector<1x128xf32> to vector<32x128xf32>
    %143 = arith.addf %140, %142 : vector<32x128xf32>
    %cst_144 = arith.constant 0.000000e+00 : f32
    %144 = vector.broadcast %cst_144 : f32 to vector<32x128xf32>
    %145 = arith.maximumf %143, %144 : vector<32x128xf32>
    %c0_145 = arith.constant 0 : index
    %c3_146 = arith.constant 3 : index
    %c0_147 = arith.constant 0 : index
    %146 = vector.load %arg11[%c0_145, %c3_146, %c0_147] : memref<2x23x128xf32, #tpu.memory_space<vmem>>, vector<2x16x128xf32>
    %147 = vector.shape_cast %146 : vector<2x16x128xf32> to vector<32x128xf32>
    %148 = arith.truncf %147 : vector<32x128xf32> to vector<32x128xbf16>
    %c0_148 = arith.constant 0 : index
    %c0_149 = arith.constant 0 : index
    %149 = vector.load %arg8[%c0_148, %c0_149] : memref<128x128xbf16, #tpu.memory_space<vmem>>, vector<128x128xbf16>
    %cst_150 = arith.constant dense<0.000000e+00> : vector<32x128xf32>
    %150 = tpu.matmul %148, %149, %cst_150 {dimension_numbers = #tpu.dot_dimension_numbers<[1], [0], [0], [1], [0, 0, 1, 1], [], []>} : vector<32x128xbf16>, vector<128x128xbf16>, vector<32x128xf32> -> vector<32x128xf32>
    %151 = arith.addf %145, %150 : vector<32x128xf32>
    %c0_151 = arith.constant 0 : index
    %c0_152 = arith.constant 0 : index
    %152 = vector.load %arg9[%c0_151, %c0_152] : memref<1x128xf32, #tpu.memory_space<vmem>>, vector<1x128xf32>
    %153 = vector.broadcast %152 : vector<1x128xf32> to vector<32x128xf32>
    %154 = arith.addf %151, %153 : vector<32x128xf32>
    %155 = vector.extract_strided_slice %154 {offsets = [0, 0], sizes = [32, 8], strides = [1, 1]} : vector<32x128xf32> to vector<32x8xf32>
    %156 = vector.shape_cast %155 : vector<32x8xf32> to vector<2x16x8xf32>
    %c0_153 = arith.constant 0 : index
    %c0_154 = arith.constant 0 : index
    %c0_155 = arith.constant 0 : index
    %157 = vector.load %arg10[%c0_153, %c0_154, %c0_155] : memref<2x16x8xf32, #tpu.memory_space<vmem>>, vector<2x16x8xf32>
    tpu.vector_store %arg10[%c0_153, %c0_154, %c0_155], %156 {strides = array<i32>} : memref<2x16x8xf32, #tpu.memory_space<vmem>>, vector<2x16x8xf32>,
    return
  }
  func.func @transform_0(%arg0: i32) -> (i32, i32, i32) {
    %c0_i32 = arith.constant 0 : i32
    %c0_i32_0 = arith.constant 0 : i32
    %c0_i32_1 = arith.constant 0 : i32
    return %arg0, %c0_i32, %c0_i32_0 : i32, i32, i32
  }
  func.func @transform_1(%arg0: i32) -> (i32, i32, i32) {
    %c0_i32 = arith.constant 0 : i32
    %c0_i32_0 = arith.constant 0 : i32
    %c0_i32_1 = arith.constant 0 : i32
    %c0_i32_2 = arith.constant 0 : i32
    return %c0_i32, %c0_i32_0, %c0_i32_1 : i32, i32, i32
  }
  func.func @transform_2(%arg0: i32) -> (i32, i32) {
    %c0_i32 = arith.constant 0 : i32
    %c0_i32_0 = arith.constant 0 : i32
    %c0_i32_1 = arith.constant 0 : i32
    return %c0_i32, %c0_i32_0 : i32, i32
  }
  func.func @transform_3(%arg0: i32) -> (i32, i32, i32) {
    %c0_i32 = arith.constant 0 : i32
    %c0_i32_0 = arith.constant 0 : i32
    %c0_i32_1 = arith.constant 0 : i32
    %c0_i32_2 = arith.constant 0 : i32
    return %c0_i32, %c0_i32_0, %c0_i32_1 : i32, i32, i32
  }
  func.func @transform_4(%arg0: i32) -> (i32, i32) {
    %c0_i32 = arith.constant 0 : i32
    %c0_i32_0 = arith.constant 0 : i32
    %c0_i32_1 = arith.constant 0 : i32
    return %c0_i32, %c0_i32_0 : i32, i32
  }
  func.func @transform_5(%arg0: i32) -> (i32, i32, i32) {
    %c0_i32 = arith.constant 0 : i32
    %c0_i32_0 = arith.constant 0 : i32
    %c0_i32_1 = arith.constant 0 : i32
    %c0_i32_2 = arith.constant 0 : i32
    return %c0_i32, %c0_i32_0, %c0_i32_1 : i32, i32, i32
  }
  func.func @transform_6(%arg0: i32) -> (i32, i32) {
    %c0_i32 = arith.constant 0 : i32
    %c0_i32_0 = arith.constant 0 : i32
    %c0_i32_1 = arith.constant 0 : i32
    return %c0_i32, %c0_i32_0 : i32, i32
  }
  func.func @transform_7(%arg0: i32) -> (i32, i32) {
    %c0_i32 = arith.constant 0 : i32
    %c0_i32_0 = arith.constant 0 : i32
    %c0_i32_1 = arith.constant 0 : i32
    return %c0_i32, %c0_i32_0 : i32, i32
  }
  func.func @transform_8(%arg0: i32) -> (i32, i32) {
    %c0_i32 = arith.constant 0 : i32
    %c0_i32_0 = arith.constant 0 : i32
    %c0_i32_1 = arith.constant 0 : i32
    return %c0_i32, %c0_i32_0 : i32, i32
  }
  func.func @transform_9(%arg0: i32) -> (i32, i32, i32) {
    %c0_i32 = arith.constant 0 : i32
    %c0_i32_0 = arith.constant 0 : i32
    %c0_i32_1 = arith.constant 0 : i32
    return %arg0, %c0_i32, %c0_i32_0 : i32, i32, i32
  }
}

</mosaic_0001>

<bundles_post_ra>
// kernel: resnet_block_forward.1
= control target key start
LH: loop header
LB: loop body
LE: loop exit
PB: predicated region body
PF: predicated region fallthrough
CT: control target
= control target key end

     0   :  { %14 = vsyncpa [#allocation6], 0  ;;  %s3337_s0 = inlined_call_operand.vmem [shape: f32[2,16,4], index: 0, kind: input, shape index: {}]   ;;  %s3338_s1 = inlined_call_operand.hbm [shape: bf16[8,128,128], index: 1, kind: input, shape index: {}]   ;;  %s3339_s2 = inlined_call_operand.vmem [shape: f32[1,128], index: 2, kind: input, shape index: {}]   ;;  %s3340_s3 = inlined_call_operand.hbm [shape: bf16[5,128,128], index: 3, kind: input, shape index: {}]   ;;  %s3341_s4 = inlined_call_operand.vmem [shape: f32[1,128], index: 4, kind: input, shape index: {}]   ;;  %s3342_s5 = inlined_call_operand.hbm [shape: bf16[3,128,128], index: 5, kind: input, shape index: {}]   ;;  %s3343_s6 = inlined_call_operand.vmem [shape: f32[1,128], index: 6, kind: input, shape index: {}]   ;;  %s3344_s7 = inlined_call_operand.vmem [shape: bf16[128,128], index: 7, kind: input, shape index: {}]   ;;  %s3345_s8 = inlined_call_operand.vmem [shape: f32[1,128], index: 8, kind: input, shape index: {}]   ;;  %s3346_s9 = inlined_call_operand.vmem [shape: f32[2,16,8], index: 9, kind: output, shape index: {}]  }
   0x1   :  { %15 = vsyncpa [#allocation8], 0  ;;  %s3166_s30 = smov [#allocation7]   ;;  %s3167_s11 = smov [#allocation5]  }
   0x2   :  { %s37_s10 = sshll.u32 %s3166_s30, 4  ;;  %s23_s12 = sshll.u32 %s3167_s11, 4  ;;  %s38_s10 = int_to_ptr.vmem [resolvable:$true] %s37_s10  ;;  %s3222_s12 = int_to_ptr.vmem [resolvable:$true] %s23_s12 }
   0x3   :  { %s3096_s15 = scalar_lea.hbm %s3340_s3, 5120 }
   0x4   :  { %p3097_p0 = scmp.ne.s32.totalorder %s3340_s3, %s3096_s15  ;;  %p3100_p1 = scmp.lt.u32.totalorder %s3096_s15, %s3340_s3 }
   0x6   :  { %p3102_p2 = pnand %p3100_p1, %p3097_p0 }
   0x8   :  { %3105 = shalt.err (!%p3102_p2)
}
   0x9   :  { %s3106_s20 = scalar_lea.vmem %s38_s10, 5120  ;;  %p3111_p4 = scmp.lt.s32.totalorder %s38_s10, %s38_s10 }
   0xa   :  { %p3107_p3 = scmp.ne.s32.totalorder %s38_s10, %s3106_s20  ;;  %p3112_p5 = scmp.lt.s32.totalorder %s3106_s20, %s3106_s20 }
   0xc   :  { %p3113_p6 = por %p3112_p5, %p3111_p4 }
   0xe   :  { %p3114_p7 = pnand %p3113_p6, %p3107_p3 }
  0x10   :  { %3117 = shalt.err (!%p3114_p7)
}
  0x11   :  { %s3168_s21 = smov 64   ;;  %s3169_s22 = smov 4  }
  0x12   :  { %43 = dma.hbm_to_vmem [thread:$0]  %s3340_s3, 5120, %s38_s10, [#allocation8], %s3168_s21, %s3168_s21, %s3169_s22  }
  0x13   :  { %s3118_s27 = scalar_lea.hbm %s3338_s1, 8192 }
  0x14   :  { %p3119_p8 = scmp.ne.s32.totalorder %s3338_s1, %s3118_s27  ;;  %p3122_p9 = scmp.lt.u32.totalorder %s3118_s27, %s3338_s1 }
  0x16   :  { %p3124_p10 = pnand %p3122_p9, %p3119_p8 }
  0x18   :  { %3127 = shalt.err (!%p3124_p10)
}
  0x19   :  { %s3128_s13 = scalar_lea.vmem %s3222_s12, 8192  ;;  %p3133_p12 = scmp.lt.s32.totalorder %s3222_s12, %s3222_s12 }
  0x1a   :  { %p3129_p11 = scmp.ne.s32.totalorder %s3222_s12, %s3128_s13  ;;  %p3134_p13 = scmp.lt.s32.totalorder %s3128_s13, %s3128_s13 }
  0x1c   :  { %p3135_p0 = por %p3134_p13, %p3133_p12 }
  0x1e   :  { %p3136_p1 = pnand %p3135_p0, %p3129_p11 }
  0x20   :  { %3139 = shalt.err (!%p3136_p1)
}
  0x21   :  { %29 = dma.hbm_to_vmem [thread:$0]  %s3338_s1, 8192, %s3222_s12, [#allocation6], %s3168_s21, %s3168_s21, %s3169_s22  }
  0x22   :  { %s3170_s14 = smov [#allocation9]   ;;  %s3140_s18 = scalar_lea.hbm %s3342_s5, 3072 }
  0x23   :  { %s51_s15 = sshll.u32 %s3170_s14, 4  ;;  %p3141_p2 = scmp.ne.s32.totalorder %s3342_s5, %s3140_s18  ;;  %s52_s15 = int_to_ptr.vmem [resolvable:$true] %s51_s15 }
  0x24   :  { %p3144_p3 = scmp.lt.u32.totalorder %s3140_s18, %s3342_s5 }
  0x26   :  { %p3146_p4 = pnand %p3144_p3, %p3141_p2 }
  0x28   :  { %3149 = shalt.err (!%p3146_p4)
}
  0x29   :  { %s3150_s25 = scalar_lea.vmem %s52_s15, 3072  ;;  %p3155_p6 = scmp.lt.s32.totalorder %s52_s15, %s52_s15 }
  0x2a   :  { %p3151_p5 = scmp.ne.s32.totalorder %s52_s15, %s3150_s25  ;;  %p3156_p7 = scmp.lt.s32.totalorder %s3150_s25, %s3150_s25 }
  0x2c   :  { %p3157_p8 = por %p3156_p7, %p3155_p6 }
  0x2e   :  { %p3158_p9 = pnand %p3157_p8, %p3151_p5 }
  0x30   :  { %3161 = shalt.err (!%p3158_p9)
}
  0x31   :  { %57 = dma.hbm_to_vmem [thread:$0]  %s3342_s5, 3072, %s52_s15, [#allocation8], %s3168_s21, %s3168_s21, %s3169_s22  }
  0x32   :  { %3162 = dma.done.wait [#allocation6], 8192  }
  0x33   :  { %3163 = vsyncadd [#allocation6], 4294959104 }
  0x34   :  { %3164 = dma.done.wait [#allocation8], 8192  }
  0x35   :  { %3165 = vsyncadd [#allocation8], 4294959104  ;;  %v3171_v0 = vmov 0.0   ;;  %v2960_v1 = vld [vmem:[#allocation5 + $0x40] sm:$0xff]   ;;  %v2961_v2 = vld [vmem:[#allocation5 + $0x48] sm:$0xff]   ;;  %vm84_vm0 = vcmask 31744  }
  0x36   :  { %74 = vst [vmem:[#allocation2] sm:$0xff] %v3171_v0  ;;  %75 = vst [vmem:[#allocation2 + $0x8] sm:$0xff] %v3171_v0  ;;  %2562 = vmatprep.subr.bf16.mxu0 %v2960_v1  ;;  %v2962_v3 = vld [vmem:[#allocation5 + $0x50] sm:$0xff]   ;;  %v2963_v4 = vld [vmem:[#allocation5 + $0x58] sm:$0xff]   ;;  %vm2241_vm1 = vcmask 64512  }
  0x37   :  { %76 = vst [vmem:[#allocation2 + $0x10] sm:$0x7f] %v3171_v0  ;;  %77 = vst [vmem:[#allocation2 + $0x18] sm:$0xff] %v3171_v0  ;;  %2563 = vmatpush3.bf16.msra.mxu0 %v2960_v1  ;;  %v80_v5 = vld [vmem:[%s3337_s0] sm:$0xff]  ;;  %v81_v6 = vld [vmem:[%s3337_s0 + $0x8] sm:$0xff] }
  0x38   :  { %78 = vst [vmem:[#allocation2 + $0x20] sm:$0xff] %v3171_v0  ;;  %79 = vst [vmem:[#allocation2 + $0x28] sm:$0x7f] %v3171_v0  ;;  %2564 = vmatprep.subr.bf16.mxu0 %v2961_v2  ;;  %v82_v7 = vld [vmem:[%s3337_s0 + $0x10] sm:$0xff]  ;;  %v83_v8 = vld [vmem:[%s3337_s0 + $0x18] sm:$0xff] }
  0x39   :  { %1087 = vst [vmem:[#allocation3] sm:$0x3] %v3171_v0  ;;  %1088 = vst [vmem:[#allocation3 + $0x18] sm:$0x3] %v3171_v0  ;;  %v2964_v9 = vld [vmem:[#allocation5 + $0x60] sm:$0xff]   ;;  %v2965_v10 = vld [vmem:[#allocation5 + $0x68] sm:$0xff]  }
  0x3a   :  { %1089 = vst [vmem:[#allocation3 + $0x12] sm:$0x3] %v3171_v0  ;;  %1090 = vst [vmem:[#allocation3 + $0x2a] sm:$0x3] %v3171_v0  ;;  %v2966_v14 = vld [vmem:[#allocation5 + $0x70] sm:$0xff]   ;;  %v2967_v15 = vld [vmem:[#allocation5 + $0x78] sm:$0xff]  }
  0x3b   :  { %1721 = vst [vmem:[#allocation4] sm:$0x1] %v3171_v0  ;;  %1722 = vst [vmem:[#allocation4 + $0x18] sm:$0x1] %v3171_v0  ;;  %2565 = vmatpush3.bf16.msra.mxu0 %v2961_v2  ;;  %v2968_v16 = vld [vmem:[#allocation5] sm:$0xff]   ;;  %v2969_v23 = vld [vmem:[#allocation5 + $0x8] sm:$0xff]  }
  0x3c   :  { %1723 = vst [vmem:[#allocation4 + $0x11] sm:$0x1] %v3171_v0  ;;  %1724 = vst [vmem:[#allocation4 + $0x29] sm:$0x1] %v3171_v0  ;;  %2566 = vmatprep.subr.bf16.mxu0 %v2962_v3  ;;  %v2970_v24 = vld [vmem:[#allocation5 + $0x10] sm:$0xff]   ;;  %v2971_v25 = vld [vmem:[#allocation5 + $0x18] sm:$0xff]  }
  0x3d   :  { %85 = vst.msk [vmem:[#allocation2 + $0x3] sm:$0xff] %vm84_vm0, %v80_v5  ;;  %86 = vst.msk [vmem:[#allocation2 + $0xb] sm:$0xff] %vm84_vm0, %v81_v6  ;;  %v2972_v26 = vld [vmem:[#allocation5 + $0x20] sm:$0xff]   ;;  %v2973_v27 = vld [vmem:[#allocation5 + $0x28] sm:$0xff]  }
  0x3e   :  { %87 = vst.msk [vmem:[#allocation2 + $0x1b] sm:$0xff] %vm84_vm0, %v82_v7  ;;  %88 = vst.msk [vmem:[#allocation2 + $0x23] sm:$0xff] %vm84_vm0, %v83_v8  ;;  %v2974_v28 = vld [vmem:[#allocation5 + $0x30] sm:$0xff]   ;;  %v2975_v29 = vld [vmem:[#allocation5 + $0x38] sm:$0xff]  }
  0x3f   :  { %2567 = vmatpush3.bf16.msra.mxu0 %v2962_v3  ;;  %v2976_v32 = vld [vmem:[#allocation5 + $0x80] sm:$0xff]   ;;  %v2977_v37 = vld [vmem:[#allocation5 + $0x88] sm:$0xff]   ;;  %v2978_v38 = vld [vmem:[#allocation5 + $0x90] sm:$0xff]  }
  0x40   :  { %2568 = vmatprep.subr.bf16.mxu0 %v2963_v4  ;;  %v2979_v39 = vld [vmem:[#allocation5 + $0x98] sm:$0xff]   ;;  %v2980_v40 = vld [vmem:[#allocation5 + $0xa0] sm:$0xff]   ;;  %v2981_v41 = vld [vmem:[#allocation5 + $0xa8] sm:$0xff]  }
  0x41   :  { %v2982_v42 = vld [vmem:[#allocation5 + $0xb0] sm:$0xff]   ;;  %v2983_v43 = vld [vmem:[#allocation5 + $0xb8] sm:$0xff]   ;;  %v2984_v46 = vld [vmem:[#allocation5 + $0xc0] sm:$0xff]  }
  0x42   :  { %v2985_v51 = vld [vmem:[#allocation5 + $0xc8] sm:$0xff]   ;;  %v2986_v52 = vld [vmem:[#allocation5 + $0xd0] sm:$0xff]   ;;  %v2987_v53 = vld [vmem:[#allocation5 + $0xd8] sm:$0xff]  }
  0x43   :  { %2569 = vmatpush3.bf16.msra.mxu0 %v2963_v4  ;;  %v2988_v54 = vld [vmem:[#allocation5 + $0xe0] sm:$0xff]   ;;  %v2989_v55 = vld [vmem:[#allocation5 + $0xe8] sm:$0xff]   ;;  %v2990_v56 = vld [vmem:[#allocation5 + $0xf0] sm:$0xff]  }
  0x44   :  { %2570 = vmatprep.subr.bf16.mxu0 %v2964_v9  ;;  %v111_v11 = vld [vmem:[#allocation2 + $0x1] sm:$0xff]  ;;  %v112_v12 = vld [vmem:[#allocation2 + $0x9] sm:$0xff]  ;;  %v2993_v1 = vld [vmem:[#allocation5 + $0x108] sm:$0xff]  }
  0x45   :  { %v115_v13 = vpack.c.bf16 %v112_v12, %v111_v11  ;;  %v113_v17 = vld [vmem:[#allocation2 + $0x19] sm:$0xff]  ;;  %v114_v18 = vld [vmem:[#allocation2 + $0x21] sm:$0xff]  ;;  %v329_v34 = vld [vmem:[#allocation2 + $0xa] sm:$0xff] }
  0x46   :  { %v89_v19 = vld [vmem:[#allocation2] sm:$0xff]  ;;  %v90_v20 = vld [vmem:[#allocation2 + $0x8] sm:$0xff]  ;;  %v116_v21 = vpack.c.bf16 %v114_v18, %v113_v17  ;;  %v91_v30 = vld [vmem:[#allocation2 + $0x18] sm:$0xff] }
  0x47   :  { %2571 = vmatpush3.bf16.msra.mxu0 %v2964_v9  ;;  %2578 = vmatprep.mubr.bf16.mxu0 %v115_v13  ;;  %v93_v22 = vpack.c.bf16 %v90_v20, %v89_v19  ;;  %v92_v31 = vld [vmem:[#allocation2 + $0x20] sm:$0xff]  ;;  %v453_v48 = vld [vmem:[#allocation2 + $0xb] sm:$0xff]  ;;  %v3025_v3 = vld [vmem:[#allocation7 + $0x48] sm:$0xff]  }
  0x48   :  { %2572 = vmatprep.subr.bf16.mxu0 %v2965_v10  ;;  %v328_v33 = vld [vmem:[#allocation2 + $0x2] sm:$0xff]  ;;  %v94_v35 = vpack.c.bf16 %v92_v31, %v91_v30  ;;  %v330_v44 = vld [vmem:[#allocation2 + $0x1a] sm:$0xff]  ;;  %v2992_v60 = vld [vmem:[#allocation5 + $0x100] sm:$0xff]  }
  0x49   :  { %v332_v36 = vpack.c.bf16 %v329_v34, %v328_v33  ;;  %v331_v45 = vld [vmem:[#allocation2 + $0x22] sm:$0xff]  ;;  %v577_v62 = vld [vmem:[#allocation2 + $0xc] sm:$0xff]  ;;  %v2997_v9 = vld [vmem:[#allocation5 + $0x128] sm:$0xff]  }
  0x4a   :  { %v452_v47 = vld [vmem:[#allocation2 + $0x3] sm:$0xff]  ;;  %v333_v49 = vpack.c.bf16 %v331_v45, %v330_v44  ;;  %v454_v58 = vld [vmem:[#allocation2 + $0x1b] sm:$0xff]  ;;  %v3024_v2 = vld [vmem:[#allocation7 + $0x40] sm:$0xff]  }
  0x4b   :  { %2573 = vmatpush3.bf16.msra.mxu0 %v2965_v10  ;;  %v456_v50 = vpack.c.bf16 %v453_v48, %v452_v47  ;;  %v2991_v57 = vld [vmem:[#allocation5 + $0xf8] sm:$0xff]   ;;  %v2994_v4 = vld [vmem:[#allocation5 + $0x110] sm:$0xff]   ;;  %2722 = vmatprep.subr.bf16.mxu1 %v3024_v2  ;;  %v2996_v8 = vld [vmem:[#allocation5 + $0x120] sm:$0xff]  }
  0x4c   :  { %2574 = vmatprep.subr.bf16.mxu0 %v2966_v14  ;;  %v455_v59 = vld [vmem:[#allocation2 + $0x23] sm:$0xff]  ;;  %2723 = vmatpush3.bf16.msra.mxu1 %v3024_v2  ;;  %v3001_v19 = vld [vmem:[#allocation5 + $0x148] sm:$0xff]   ;;  %v825_v30 = vld [vmem:[#allocation2 + $0xe] sm:$0xff] }
  0x4d   :  { %v576_v61 = vld [vmem:[#allocation2 + $0x4] sm:$0xff]  ;;  %v457_v63 = vpack.c.bf16 %v455_v59, %v454_v58  ;;  %2724 = vmatprep.subr.bf16.mxu1 %v3025_v3  ;;  %v578_v12 = vld [vmem:[#allocation2 + $0x1c] sm:$0xff]  ;;  %v949_v44 = vld [vmem:[#allocation2 + $0xf] sm:$0xff] }
  0x4e   :  { %v580_v0 = vpack.c.bf16 %v577_v62, %v576_v61  ;;  %v3026_v5 = vld [vmem:[#allocation7 + $0x50] sm:$0xff]   ;;  %v2995_v6 = vld [vmem:[#allocation5 + $0x118] sm:$0xff]   ;;  %v3009_v33 = vld [vmem:[#allocation5 + $0x188] sm:$0xff]  }
  0x4f   :  { %2575 = vmatpush3.bf16.msra.mxu0 %v2966_v14  ;;  %v3027_v7 = vld [vmem:[#allocation7 + $0x58] sm:$0xff]   ;;  %v2998_v10 = vld [vmem:[#allocation5 + $0x130] sm:$0xff]   ;;  %v3000_v14 = vld [vmem:[#allocation5 + $0x140] sm:$0xff]  }
  0x50   :  { %2576 = vmatprep.subr.bf16.mxu0 %v2967_v15  ;;  %2725 = vmatpush3.bf16.msra.mxu1 %v3025_v3  ;;  %v2999_v11 = vld [vmem:[#allocation5 + $0x138] sm:$0xff]   ;;  %v3002_v20 = vld [vmem:[#allocation5 + $0x150] sm:$0xff]   ;;  %v3017_v47 = vld [vmem:[#allocation5 + $0x1c8] sm:$0xff]  }
  0x51   :  { %2726 = vmatprep.subr.bf16.mxu1 %v3026_v5  ;;  %v579_v13 = vld [vmem:[#allocation2 + $0x24] sm:$0xff]  ;;  %v3029_v58 = vld [vmem:[#allocation7 + $0x68] sm:$0xff]   ;;  %v3032_v61 = vld [vmem:[#allocation7] sm:$0xff]  }
  0x52   :  { %v581_v17 = vpack.c.bf16 %v579_v13, %v578_v12  ;;  %v3010_v34 = vld [vmem:[#allocation5 + $0x190] sm:$0xff]  }
  0x53   :  { %2577 = vmatpush3.bf16.msra.mxu0 %v2967_v15  ;;  %v700_v15 = vld [vmem:[#allocation2 + $0x5] sm:$0xff]  ;;  %v2316_v62 = vld [vmem:[%s3339_s2] ss:$0 sm:$0xff] }
  0x54   :  { %2582 = vmatprep.subr.bf16.mxu0 %v2968_v16  ;;  %2727 = vmatpush3.bf16.msra.mxu1 %v3026_v5  ;;  %v3018_v48 = vld [vmem:[#allocation5 + $0x1d0] sm:$0xff]  }
  0x55   :  { %2728 = vmatprep.subr.bf16.mxu1 %v3027_v7  ;;  %v3030_v59 = vld [vmem:[#allocation7 + $0x70] sm:$0xff]  }
  0x56   :  { %2579 = vmatmul.mubr.bf16.vlgmr.msra.gmra.mrb[0].mxu0 %v116_v21  ;;  %v3003_v21 = vld [vmem:[#allocation5 + $0x158] sm:$0xff]  }
  0x57   :  { %2583 = vmatpush3.bf16.msra.mxu0 %v2968_v16  ;;  %2598 = vmatprep.mubr.bf16.mxu0 %v93_v22  ;;  %v701_v16 = vld [vmem:[#allocation2 + $0xd] sm:$0xff] }
  0x58   :  { %2584 = vmatprep.subr.bf16.mxu0 %v2969_v23  ;;  %2729 = vmatpush3.bf16.msra.mxu1 %v3027_v7  ;;  %v704_v18 = vpack.c.bf16 %v701_v16, %v700_v15  ;;  %v3004_v22 = vld [vmem:[#allocation5 + $0x160] sm:$0xff]  }
  0x5b   :  { %2585 = vmatpush3.bf16.msra.mxu0 %v2969_v23  ;;  %v3005_v23 = vld [vmem:[#allocation5 + $0x168] sm:$0xff]  }
  0x5c   :  { %2586 = vmatprep.subr.bf16.mxu0 %v2970_v24 }
  0x5f   :  { %2587 = vmatpush3.bf16.msra.mxu0 %v2970_v24  ;;  %v3006_v24 = vld [vmem:[#allocation5 + $0x170] sm:$0xff]  }
  0x60   :  { %2588 = vmatprep.subr.bf16.mxu0 %v2971_v25 }
  0x63   :  { %2589 = vmatpush3.bf16.msra.mxu0 %v2971_v25  ;;  %v3007_v25 = vld [vmem:[#allocation5 + $0x178] sm:$0xff]  }
  0x64   :  { %2590 = vmatprep.subr.bf16.mxu0 %v2972_v26 }
  0x67   :  { %2591 = vmatpush3.bf16.msra.mxu0 %v2972_v26  ;;  %v702_v26 = vld [vmem:[#allocation2 + $0x1d] sm:$0xff] }
  0x68   :  { %2592 = vmatprep.subr.bf16.mxu0 %v2973_v27 }
  0x6b   :  { %2593 = vmatpush3.bf16.msra.mxu0 %v2973_v27  ;;  %v703_v27 = vld [vmem:[#allocation2 + $0x25] sm:$0xff] }
  0x6c   :  { %2594 = vmatprep.subr.bf16.mxu0 %v2974_v28  ;;  %v705_v31 = vpack.c.bf16 %v703_v27, %v702_v26  ;;  %v3037_v26 = vld [vmem:[#allocation7 + $0x28] sm:$0xff]   ;;  %v3038_v27 = vld [vmem:[#allocation7 + $0x30] sm:$0xff]  }
  0x6f   :  { %2595 = vmatpush3.bf16.msra.mxu0 %v2974_v28  ;;  %v3008_v28 = vld [vmem:[#allocation5 + $0x180] sm:$0xff]  }
  0x70   :  { %2596 = vmatprep.subr.bf16.mxu0 %v2975_v29 }
  0x73   :  { %2597 = vmatpush3.bf16.msra.mxu0 %v2975_v29  ;;  %v824_v29 = vld [vmem:[#allocation2 + $0x6] sm:$0xff] }
  0x74   :  { %2602 = vmatprep.subr.bf16.mxu0 %v2976_v32 }
  0x76   :  { %2599 = vmatmul.mubr.bf16.vlgmr.msra.gmra.mrb[0].mxu0 %v94_v35  ;;  %v3011_v35 = vld [vmem:[#allocation5 + $0x198] sm:$0xff]  }
  0x77   :  { %2603 = vmatpush3.bf16.msra.mxu0 %v2976_v32  ;;  %2618 = vmatprep.mubr.bf16.mxu0 %v332_v36  ;;  %v828_v32 = vpack.c.bf16 %v825_v30, %v824_v29  ;;  %v3012_v36 = vld [vmem:[#allocation5 + $0x1a0] sm:$0xff]  }
  0x78   :  { %2604 = vmatprep.subr.bf16.mxu0 %v2977_v37  ;;  %v3040_v29 = vld [vmem:[#allocation7 + $0x80] sm:$0xff]  }
  0x7b   :  { %2605 = vmatpush3.bf16.msra.mxu0 %v2977_v37  ;;  %v3013_v37 = vld [vmem:[#allocation5 + $0x1a8] sm:$0xff]  }
  0x7c   :  { %2606 = vmatprep.subr.bf16.mxu0 %v2978_v38 }
  0x7f   :  { %2607 = vmatpush3.bf16.msra.mxu0 %v2978_v38  ;;  %v3014_v38 = vld [vmem:[#allocation5 + $0x1b0] sm:$0xff]  }
  0x80   :  { %2608 = vmatprep.subr.bf16.mxu0 %v2979_v39 }
  0x83   :  { %2609 = vmatpush3.bf16.msra.mxu0 %v2979_v39  ;;  %v3015_v39 = vld [vmem:[#allocation5 + $0x1b8] sm:$0xff]  }
  0x84   :  { %2610 = vmatprep.subr.bf16.mxu0 %v2980_v40 }
  0x87   :  { %2611 = vmatpush3.bf16.msra.mxu0 %v2980_v40  ;;  %v826_v40 = vld [vmem:[#allocation2 + $0x1e] sm:$0xff] }
  0x88   :  { %2612 = vmatprep.subr.bf16.mxu0 %v2981_v41 }
  0x8b   :  { %2613 = vmatpush3.bf16.msra.mxu0 %v2981_v41  ;;  %v827_v41 = vld [vmem:[#allocation2 + $0x26] sm:$0xff] }
  0x8c   :  { %2614 = vmatprep.subr.bf16.mxu0 %v2982_v42  ;;  %v829_v45 = vpack.c.bf16 %v827_v41, %v826_v40  ;;  %v3048_v40 = vld [vmem:[#allocation7 + $0xc0] sm:$0xff]  }
  0x8f   :  { %2615 = vmatpush3.bf16.msra.mxu0 %v2982_v42  ;;  %v3016_v42 = vld [vmem:[#allocation5 + $0x1c0] sm:$0xff]  }
  0x90   :  { %2616 = vmatprep.subr.bf16.mxu0 %v2983_v43 }
  0x93   :  { %2617 = vmatpush3.bf16.msra.mxu0 %v2983_v43  ;;  %v948_v43 = vld [vmem:[#allocation2 + $0x7] sm:$0xff] }
  0x94   :  { %2622 = vmatprep.subr.bf16.mxu0 %v2984_v46 }
  0x96   :  { %2619 = vmatmul.mubr.bf16.vlgmr.msra.gmra.mrb[0].mxu0 %v333_v49  ;;  %v3019_v49 = vld [vmem:[#allocation5 + $0x1d8] sm:$0xff]  }
  0x97   :  { %2623 = vmatpush3.bf16.msra.mxu0 %v2984_v46  ;;  %2638 = vmatprep.mubr.bf16.mxu0 %v456_v50  ;;  %v952_v46 = vpack.c.bf16 %v949_v44, %v948_v43  ;;  %v3020_v50 = vld [vmem:[#allocation5 + $0x1e0] sm:$0xff]   ;;  %v3049_v43 = vld [vmem:[#allocation7 + $0xc8] sm:$0xff]  }
  0x98   :  { %2624 = vmatprep.subr.bf16.mxu0 %v2985_v51 }
  0x9b   :  { %2625 = vmatpush3.bf16.msra.mxu0 %v2985_v51  ;;  %v3021_v51 = vld [vmem:[#allocation5 + $0x1e8] sm:$0xff]  }
  0x9c   :  { %2626 = vmatprep.subr.bf16.mxu0 %v2986_v52 }
  0x9f   :  { %2627 = vmatpush3.bf16.msra.mxu0 %v2986_v52  ;;  %v3022_v52 = vld [vmem:[#allocation5 + $0x1f0] sm:$0xff]  }
  0xa0   :  { %2628 = vmatprep.subr.bf16.mxu0 %v2987_v53 }
  0xa3   :  { %2629 = vmatpush3.bf16.msra.mxu0 %v2987_v53  ;;  %v3023_v53 = vld [vmem:[#allocation5 + $0x1f8] sm:$0xff]  }
  0xa4   :  { %2630 = vmatprep.subr.bf16.mxu0 %v2988_v54 }
  0xa7   :  { %2631 = vmatpush3.bf16.msra.mxu0 %v2988_v54  ;;  %v950_v54 = vld [vmem:[#allocation2 + $0x1f] sm:$0xff] }
  0xa8   :  { %2632 = vmatprep.subr.bf16.mxu0 %v2989_v55 }
  0xab   :  { %2633 = vmatpush3.bf16.msra.mxu0 %v2989_v55  ;;  %v951_v55 = vld [vmem:[#allocation2 + $0x27] sm:$0xff] }
  0xac   :  { %2634 = vmatprep.subr.bf16.mxu0 %v2990_v56 }
  0xaf   :  { %2635 = vmatpush3.bf16.msra.mxu0 %v2990_v56  ;;  %v953_v56 = vpack.c.bf16 %v951_v55, %v950_v54 }
  0xb0   :  { %2636 = vmatprep.subr.bf16.mxu0 %v2991_v57 }
  0xb3   :  { %2637 = vmatpush3.bf16.msra.mxu0 %v2991_v57  ;;  %v3028_v57 = vld [vmem:[#allocation7 + $0x60] sm:$0xff]  }
  0xb4   :  { %2642 = vmatprep.subr.bf16.mxu0 %v2992_v60  ;;  %2730 = vmatprep.subr.bf16.mxu1 %v3028_v57 }
  0xb5   :  { %2731 = vmatpush3.bf16.msra.mxu1 %v3028_v57  ;;  %v3057_v57 = vld [vmem:[#allocation7 + $0x108] sm:$0xff]  }
  0xb6   :  { %2639 = vmatmul.mubr.bf16.vlgmr.msra.gmra.mrb[0].mxu0 %v457_v63  ;;  %2732 = vmatprep.subr.bf16.mxu1 %v3029_v58 }
  0xb7   :  { %2643 = vmatpush3.bf16.msra.mxu0 %v2992_v60  ;;  %2658 = vmatprep.mubr.bf16.mxu0 %v580_v0  ;;  %v3031_v60 = vld [vmem:[#allocation7 + $0x78] sm:$0xff]  }
  0xb8   :  { %2644 = vmatprep.subr.bf16.mxu0 %v2993_v1 }
  0xb9   :  { %2733 = vmatpush3.bf16.msra.mxu1 %v3029_v58 }
  0xba   :  { %2734 = vmatprep.subr.bf16.mxu1 %v3030_v59 }
  0xbb   :  { %2645 = vmatpush3.bf16.msra.mxu0 %v2993_v1 }
  0xbc   :  { %2646 = vmatprep.subr.bf16.mxu0 %v2994_v4 }
  0xbd   :  { %2735 = vmatpush3.bf16.msra.mxu1 %v3030_v59  ;;  %v3058_v59 = vld [vmem:[#allocation7 + $0x110] sm:$0xff]  }
  0xbe   :  { %2736 = vmatprep.subr.bf16.mxu1 %v3031_v60 }
  0xbf   :  { %2647 = vmatpush3.bf16.msra.mxu0 %v2994_v4 }
  0xc0   :  { %2648 = vmatprep.subr.bf16.mxu0 %v2995_v6 }
  0xc1   :  { %2737 = vmatpush3.bf16.msra.mxu1 %v3031_v60  ;;  %v3059_v60 = vld [vmem:[#allocation7 + $0x118] sm:$0xff]  }
  0xc2   :  { %2742 = vmatprep.subr.bf16.mxu1 %v3032_v61 }
  0xc3   :  { %2649 = vmatpush3.bf16.msra.mxu0 %v2995_v6 }
  0xc4   :  { %2650 = vmatprep.subr.bf16.mxu0 %v2996_v8 }
  0xc7   :  { %2651 = vmatpush3.bf16.msra.mxu0 %v2996_v8 }
  0xc8   :  { %2652 = vmatprep.subr.bf16.mxu0 %v2997_v9 }
  0xcb   :  { %2653 = vmatpush3.bf16.msra.mxu0 %v2997_v9 }
  0xcc   :  { %2654 = vmatprep.subr.bf16.mxu0 %v2998_v10 }
  0xcf   :  { %2655 = vmatpush3.bf16.msra.mxu0 %v2998_v10 }
  0xd0   :  { %2656 = vmatprep.subr.bf16.mxu0 %v2999_v11 }
  0xd3   :  { %2657 = vmatpush3.bf16.msra.mxu0 %v2999_v11 }
  0xd4   :  { %2662 = vmatprep.subr.bf16.mxu0 %v3000_v14 }
  0xd6   :  { %2659 = vmatmul.mubr.bf16.vlgmr.msra.gmra.mrb[0].mxu0 %v581_v17 }
  0xd7   :  { %2663 = vmatpush3.bf16.msra.mxu0 %v3000_v14  ;;  %2678 = vmatprep.mubr.bf16.mxu0 %v704_v18 }
  0xd8   :  { %2664 = vmatprep.subr.bf16.mxu0 %v3001_v19 }
  0xdb   :  { %2665 = vmatpush3.bf16.msra.mxu0 %v3001_v19 }
  0xdc   :  { %2666 = vmatprep.subr.bf16.mxu0 %v3002_v20 }
  0xdf   :  { %2667 = vmatpush3.bf16.msra.mxu0 %v3002_v20 }
  0xe0   :  { %2668 = vmatprep.subr.bf16.mxu0 %v3003_v21 }
  0xe3   :  { %2669 = vmatpush3.bf16.msra.mxu0 %v3003_v21  ;;  %v3033_v21 = vld [vmem:[#allocation7 + $0x8] sm:$0xff]  }
  0xe4   :  { %2670 = vmatprep.subr.bf16.mxu0 %v3004_v22 }
  0xe7   :  { %2671 = vmatpush3.bf16.msra.mxu0 %v3004_v22 }
  0xe8   :  { %2672 = vmatprep.subr.bf16.mxu0 %v3005_v23 }
  0xeb   :  { %2673 = vmatpush3.bf16.msra.mxu0 %v3005_v23  ;;  %v3034_v23 = vld [vmem:[#allocation7 + $0x10] sm:$0xff]  }
  0xec   :  { %2674 = vmatprep.subr.bf16.mxu0 %v3006_v24 }
  0xef   :  { %2675 = vmatpush3.bf16.msra.mxu0 %v3006_v24  ;;  %v3035_v24 = vld [vmem:[#allocation7 + $0x18] sm:$0xff]  }
  0xf0   :  { %2676 = vmatprep.subr.bf16.mxu0 %v3007_v25 }
  0xf3   :  { %2677 = vmatpush3.bf16.msra.mxu0 %v3007_v25  ;;  %v3036_v25 = vld [vmem:[#allocation7 + $0x20] sm:$0xff]  }
  0xf4   :  { %2682 = vmatprep.subr.bf16.mxu0 %v3008_v28 }
  0xf6   :  { %2679 = vmatmul.mubr.bf16.vlgmr.msra.gmra.mrb[0].mxu0 %v705_v31 }
  0xf7   :  { %2683 = vmatpush3.bf16.msra.mxu0 %v3008_v28  ;;  %2698 = vmatprep.mubr.bf16.mxu0 %v828_v32  ;;  %v3039_v28 = vld [vmem:[#allocation7 + $0x38] sm:$0xff]  }
  0xf8   :  { %2684 = vmatprep.subr.bf16.mxu0 %v3009_v33 }
  0xfb   :  { %2685 = vmatpush3.bf16.msra.mxu0 %v3009_v33  ;;  %v3041_v33 = vld [vmem:[#allocation7 + $0x88] sm:$0xff]  }
  0xfc   :  { %2686 = vmatprep.subr.bf16.mxu0 %v3010_v34 }
  0xff   :  { %2687 = vmatpush3.bf16.msra.mxu0 %v3010_v34  ;;  %v3042_v34 = vld [vmem:[#allocation7 + $0x90] sm:$0xff]  }
 0x100   :  { %2688 = vmatprep.subr.bf16.mxu0 %v3011_v35 }
 0x103   :  { %2689 = vmatpush3.bf16.msra.mxu0 %v3011_v35  ;;  %v3043_v35 = vld [vmem:[#allocation7 + $0x98] sm:$0xff]  }
 0x104   :  { %2690 = vmatprep.subr.bf16.mxu0 %v3012_v36 }
 0x107   :  { %2691 = vmatpush3.bf16.msra.mxu0 %v3012_v36  ;;  %v3044_v36 = vld [vmem:[#allocation7 + $0xa0] sm:$0xff]  }
 0x108   :  { %2692 = vmatprep.subr.bf16.mxu0 %v3013_v37 }
 0x10b   :  { %2693 = vmatpush3.bf16.msra.mxu0 %v3013_v37  ;;  %v3045_v37 = vld [vmem:[#allocation7 + $0xa8] sm:$0xff]  }
 0x10c   :  { %2694 = vmatprep.subr.bf16.mxu0 %v3014_v38 }
 0x10f   :  { %2695 = vmatpush3.bf16.msra.mxu0 %v3014_v38  ;;  %v3046_v38 = vld [vmem:[#allocation7 + $0xb0] sm:$0xff]  }
 0x110   :  { %2696 = vmatprep.subr.bf16.mxu0 %v3015_v39 }
 0x113   :  { %2697 = vmatpush3.bf16.msra.mxu0 %v3015_v39  ;;  %v3047_v39 = vld [vmem:[#allocation7 + $0xb8] sm:$0xff]  }
 0x114   :  { %2702 = vmatprep.subr.bf16.mxu0 %v3016_v42 }
 0x116   :  { %2699 = vmatmul.mubr.bf16.vlgmr.msra.gmra.mrb[0].mxu0 %v829_v45  ;;  %v3050_v45 = vld [vmem:[#allocation7 + $0xd0] sm:$0xff]  }
 0x117   :  { %2703 = vmatpush3.bf16.msra.mxu0 %v3016_v42  ;;  %2718 = vmatprep.mubr.bf16.mxu0 %v952_v46  ;;  %v3051_v46 = vld [vmem:[#allocation7 + $0xd8] sm:$0xff]  }
 0x118   :  { %2704 = vmatprep.subr.bf16.mxu0 %v3017_v47 }
 0x11b   :  { %2705 = vmatpush3.bf16.msra.mxu0 %v3017_v47  ;;  %v3052_v47 = vld [vmem:[#allocation7 + $0xe0] sm:$0xff]  }
 0x11c   :  { %2706 = vmatprep.subr.bf16.mxu0 %v3018_v48 }
 0x11f   :  { %2707 = vmatpush3.bf16.msra.mxu0 %v3018_v48  ;;  %v3053_v48 = vld [vmem:[#allocation7 + $0xe8] sm:$0xff]  }
 0x120   :  { %2708 = vmatprep.subr.bf16.mxu0 %v3019_v49 }
 0x123   :  { %2709 = vmatpush3.bf16.msra.mxu0 %v3019_v49  ;;  %v3054_v49 = vld [vmem:[#allocation7 + $0xf0] sm:$0xff]  }
 0x124   :  { %2710 = vmatprep.subr.bf16.mxu0 %v3020_v50 }
 0x127   :  { %2711 = vmatpush3.bf16.msra.mxu0 %v3020_v50  ;;  %v3055_v50 = vld [vmem:[#allocation7 + $0xf8] sm:$0xff]  }
 0x128   :  { %2712 = vmatprep.subr.bf16.mxu0 %v3021_v51 }
 0x12b   :  { %2713 = vmatpush3.bf16.msra.mxu0 %v3021_v51  ;;  %v3056_v51 = vld [vmem:[#allocation7 + $0x100] sm:$0xff]  }
 0x12c   :  { %2714 = vmatprep.subr.bf16.mxu0 %v3022_v52 }
 0x12f   :  { %2715 = vmatpush3.bf16.msra.mxu0 %v3022_v52 }
 0x130   :  { %2716 = vmatprep.subr.bf16.mxu0 %v3023_v53 }
 0x133   :  { %2717 = vmatpush3.bf16.msra.mxu0 %v3023_v53 }
 0x136   :  { %2719 = vmatmul.mubr.bf16.vlgmr.msra.gmra.mrb[0].mxu0 %v953_v56 }
 0x209   :  { %v2720_v63 = vpop.f32.mrb[0].mxu0 }
 0x20a   :  { %v1081_v0 = vadd.f32 %v2720_v63, %v2316_v62  ;;  %v1053_v1 = vpop.f32.mrb[1].mxu0  ;;  %v3062_v63 = vld [vmem:[#allocation7 + $0x130] sm:$0xff]  }
 0x20b   :  { %v1079_v2 = vadd.f32 %v2316_v62, %v1053_v1  ;;  %v2721_v3 = vpop.f32.mrb[2].mxu0  ;;  %v3064_v1 = vld [vmem:[#allocation9 + $0x40] sm:$0xff]  }
 0x20c   :  { %v1085_v4 = vmax.f32 %v1081_v0, 0.0  ;;  %v1082_v5 = vadd.f32 %v2721_v3, %v2316_v62  ;;  %v1056_v6 = vpop.f32.mrb[3].mxu0  ;;  %v3063_v0 = vld [vmem:[#allocation7 + $0x138] sm:$0xff]  }
 0x20d   :  { %v1083_v7 = vmax.f32 %v1079_v2, 0.0  ;;  %v1080_v8 = vadd.f32 %v2316_v62, %v1056_v6  ;;  %v3061_v62 = vld [vmem:[#allocation7 + $0x128] sm:$0xff]   ;;  %v3066_v6 = vld [vmem:[#allocation9 + $0x50] sm:$0xff]  }
 0x20e   :  { %1093 = vst [vmem:[#allocation3 + $0x1a] sm:$0xff] %v1085_v4  ;;  %v1086_v9 = vmax.f32 %v1082_v5, 0.0  ;;  %v3065_v5 = vld [vmem:[#allocation9 + $0x48] sm:$0xff]  }
 0x20f   :  { %1091 = vst [vmem:[#allocation3 + $0x2] sm:$0xff] %v1083_v7  ;;  %v1084_v10 = vmax.f32 %v1080_v8, 0.0  ;;  %v3068_v8 = vld [vmem:[#allocation9 + $0x60] sm:$0xff]  }
 0x210   :  { %1094 = vst [vmem:[#allocation3 + $0x22] sm:$0xff] %v1086_v9  ;;  %v3289_v11 = vpack.c.bf16 %v1086_v9, %v1085_v4  ;;  %v3069_v9 = vld [vmem:[#allocation9 + $0x68] sm:$0xff]  }
 0x211   :  { %1092 = vst [vmem:[#allocation3 + $0xa] sm:$0xff] %v1084_v10  ;;  %v1338_v12 = vpack.c.bf16 %v1084_v10, %v1083_v7  ;;  %v3067_v7 = vld [vmem:[#allocation9 + $0x58] sm:$0xff]   ;;  %v3070_v10 = vld [vmem:[#allocation9 + $0x70] sm:$0xff]  }
 0x215   :  { %v1119_v18 = vld [vmem:[#allocation3 + $0x19] sm:$0xff] }
 0x216   :  { %v1117_v14 = vld [vmem:[#allocation3 + $0x1] sm:$0xff]  ;;  %v1097_v31 = vld [vmem:[#allocation3 + $0x18] sm:$0xff] }
 0x217   :  { %v1120_v13 = vld [vmem:[#allocation3 + $0x21] sm:$0xff] }
 0x218   :  { %v1118_v15 = vld [vmem:[#allocation3 + $0x9] sm:$0xff]  ;;  %v1122_v19 = vpack.c.bf16 %v1120_v13, %v1119_v18  ;;  %v1095_v20 = vld [vmem:[#allocation3] sm:$0xff]  ;;  %v3091_v18 = vld [vmem:[%s3344_s7 + $0x28] sm:$0xff]  }
 0x219   :  { %v1096_v16 = vld [vmem:[#allocation3 + $0x8] sm:$0xff]  ;;  %v1121_v17 = vpack.c.bf16 %v1118_v15, %v1117_v14  ;;  %v1098_v30 = vld [vmem:[#allocation3 + $0x20] sm:$0xff]  ;;  %v3081_v13 = vld [vmem:[%s3344_s7] sm:$0xff]  }
 0x21a   :  { %v1099_v22 = vpack.c.bf16 %v1096_v16, %v1095_v20  ;;  %v1100_v32 = vpack.c.bf16 %v1098_v30, %v1097_v31  ;;  %v1458_v41 = vld [vmem:[#allocation3 + $0x3] sm:$0xff]  ;;  %v1459_v42 = vld [vmem:[#allocation3 + $0xb] sm:$0xff]  ;;  %v1460_v52 = vld [vmem:[#allocation3 + $0x1b] sm:$0xff]  ;;  %2882 = vmatprep.subr.bf16.mxu0 %v3081_v13 }
 0x21b   :  { %2738 = vmatprep.mubr.bf16.mxu1 %v1121_v17  ;;  %v1462_v44 = vpack.c.bf16 %v1459_v42, %v1458_v41  ;;  %v1461_v53 = vld [vmem:[#allocation3 + $0x23] sm:$0xff]  ;;  %v1583_v55 = vld [vmem:[#allocation3 + $0xc] sm:$0xff]  ;;  %2883 = vmatpush3.bf16.msra.mxu0 %v3081_v13  ;;  %v3083_v14 = vld [vmem:[%s3344_s7 + $0x8] sm:$0xff]  }
 0x21c   :  { %2739 = vmatmul.mubr.bf16.vlgmr.msra.gmra.mrb[0].mxu1 %v1122_v19  ;;  %v1582_v54 = vld [vmem:[#allocation3 + $0x4] sm:$0xff]  ;;  %v1463_v56 = vpack.c.bf16 %v1461_v53, %v1460_v52  ;;  %v1584_v2 = vld [vmem:[#allocation3 + $0x1c] sm:$0xff]  ;;  %2884 = vmatprep.subr.bf16.mxu0 %v3083_v14  ;;  %v3089_v17 = vld [vmem:[%s3344_s7 + $0x20] sm:$0xff]  }
 0x21d   :  { %2743 = vmatpush3.bf16.msra.mxu1 %v3032_v61  ;;  %2758 = vmatprep.mubr.bf16.mxu1 %v1099_v22  ;;  %v1586_v58 = vpack.c.bf16 %v1583_v55, %v1582_v54  ;;  %v3060_v61 = vld [vmem:[#allocation7 + $0x120] sm:$0xff]   ;;  %v3087_v16 = vld [vmem:[%s3344_s7 + $0x18] sm:$0xff]  }
 0x21e   :  { %2744 = vmatprep.subr.bf16.mxu1 %v3033_v21  ;;  %v1585_v3 = vld [vmem:[#allocation3 + $0x24] sm:$0xff]  ;;  %v2108_v22 = vld [vmem:[#allocation2 + $0xb] sm:$0xff] }
 0x21f   :  { %v1587_v4 = vpack.c.bf16 %v1585_v3, %v1584_v2  ;;  %2885 = vmatpush3.bf16.msra.mxu0 %v3083_v14  ;;  %v3085_v15 = vld [vmem:[%s3344_s7 + $0x10] sm:$0xff]   ;;  %v3095_v20 = vld [vmem:[%s3344_s7 + $0x38] sm:$0xff]  }
 0x220   :  { %2886 = vmatprep.subr.bf16.mxu0 %v3085_v15  ;;  %v3093_v19 = vld [vmem:[%s3344_s7 + $0x30] sm:$0xff]   ;;  %v3073_v42 = vld [vmem:[#allocation9 + $0x8] sm:$0xff]  }
 0x221   :  { %2745 = vmatpush3.bf16.msra.mxu1 %v3033_v21  ;;  %v2107_v21 = vld [vmem:[#allocation2 + $0x3] sm:$0xff]  ;;  %v3080_v52 = vld [vmem:[#allocation9 + $0x80] sm:$0xff]  }
 0x222   :  { %2746 = vmatprep.subr.bf16.mxu1 %v3034_v23 }
 0x223   :  { %2887 = vmatpush3.bf16.msra.mxu0 %v3085_v15 }
 0x224   :  { %2888 = vmatprep.subr.bf16.mxu0 %v3087_v16 }
 0x225   :  { %2747 = vmatpush3.bf16.msra.mxu1 %v3034_v23  ;;  %v2111_v23 = vpack.c.bf16 %v2108_v22, %v2107_v21 }
 0x226   :  { %2748 = vmatprep.subr.bf16.mxu1 %v3035_v24 }
 0x227   :  { %2889 = vmatpush3.bf16.msra.mxu0 %v3087_v16  ;;  %2898 = vmatprep.mubr.bf16.mxu0 %v2111_v23 }
 0x228   :  { %2890 = vmatprep.subr.bf16.mxu0 %v3089_v17 }
 0x229   :  { %2749 = vmatpush3.bf16.msra.mxu1 %v3035_v24  ;;  %v2109_v24 = vld [vmem:[#allocation2 + $0x1b] sm:$0xff] }
 0x22a   :  { %2750 = vmatprep.subr.bf16.mxu1 %v3036_v25 }
 0x22b   :  { %2891 = vmatpush3.bf16.msra.mxu0 %v3089_v17 }
 0x22c   :  { %2892 = vmatprep.subr.bf16.mxu0 %v3091_v18 }
 0x22d   :  { %2751 = vmatpush3.bf16.msra.mxu1 %v3036_v25  ;;  %v2110_v25 = vld [vmem:[#allocation2 + $0x23] sm:$0xff] }
 0x22e   :  { %2752 = vmatprep.subr.bf16.mxu1 %v3037_v26 }
 0x22f   :  { %2893 = vmatpush3.bf16.msra.mxu0 %v3091_v18 }
 0x230   :  { %2894 = vmatprep.subr.bf16.mxu0 %v3093_v19 }
 0x231   :  { %2753 = vmatpush3.bf16.msra.mxu1 %v3037_v26  ;;  %v2112_v26 = vpack.c.bf16 %v2110_v25, %v2109_v24 }
 0x232   :  { %2754 = vmatprep.subr.bf16.mxu1 %v3038_v27 }
 0x233   :  { %2895 = vmatpush3.bf16.msra.mxu0 %v3093_v19  ;;  %v2391_v19 = vld [vmem:[%s3345_s8] ss:$0 sm:$0xff] }
 0x234   :  { %2896 = vmatprep.subr.bf16.mxu0 %v3095_v20 }
 0x235   :  { %2755 = vmatpush3.bf16.msra.mxu1 %v3038_v27  ;;  %v2357_v27 = vld [vmem:[%s3341_s4] ss:$0 sm:$0xff] }
 0x236   :  { %2756 = vmatprep.subr.bf16.mxu1 %v3039_v28 }
 0x237   :  { %2897 = vmatpush3.bf16.msra.mxu0 %v3095_v20 }
 0x239   :  { %2757 = vmatpush3.bf16.msra.mxu1 %v3039_v28 }
 0x23a   :  { %2762 = vmatprep.subr.bf16.mxu1 %v3040_v29  ;;  %2899 = vmatmul.mubr.bf16.vlgmr.msra.gmra.mrb[4].mxu0 %v2112_v26 }
 0x23c   :  { %2759 = vmatmul.mubr.bf16.vlgmr.msra.gmra.mrb[0].mxu1 %v1100_v32 }
 0x23d   :  { %2763 = vmatpush3.bf16.msra.mxu1 %v3040_v29  ;;  %2778 = vmatprep.mubr.bf16.mxu1 %v1338_v12  ;;  %v3072_v12 = vld [vmem:[#allocation9] sm:$0xff]  }
 0x23e   :  { %2764 = vmatprep.subr.bf16.mxu1 %v3041_v33 }
 0x241   :  { %2765 = vmatpush3.bf16.msra.mxu1 %v3041_v33 }
 0x242   :  { %2766 = vmatprep.subr.bf16.mxu1 %v3042_v34 }
 0x245   :  { %2767 = vmatpush3.bf16.msra.mxu1 %v3042_v34 }
 0x246   :  { %2768 = vmatprep.subr.bf16.mxu1 %v3043_v35 }
 0x249   :  { %2769 = vmatpush3.bf16.msra.mxu1 %v3043_v35 }
 0x24a   :  { %2770 = vmatprep.subr.bf16.mxu1 %v3044_v36 }
 0x24d   :  { %2771 = vmatpush3.bf16.msra.mxu1 %v3044_v36 }
 0x24e   :  { %2772 = vmatprep.subr.bf16.mxu1 %v3045_v37 }
 0x251   :  { %2773 = vmatpush3.bf16.msra.mxu1 %v3045_v37 }
 0x252   :  { %2774 = vmatprep.subr.bf16.mxu1 %v3046_v38 }
 0x255   :  { %2775 = vmatpush3.bf16.msra.mxu1 %v3046_v38 }
 0x256   :  { %2776 = vmatprep.subr.bf16.mxu1 %v3047_v39 }
 0x259   :  { %2777 = vmatpush3.bf16.msra.mxu1 %v3047_v39 }
 0x25a   :  { %2782 = vmatprep.subr.bf16.mxu1 %v3048_v40 }
 0x25c   :  { %2779 = vmatmul.mubr.bf16.vlgmr.msra.gmra.mrb[0].mxu1 %v3289_v11  ;;  %v3071_v11 = vld [vmem:[#allocation9 + $0x78] sm:$0xff]  }
 0x25d   :  { %2783 = vmatpush3.bf16.msra.mxu1 %v3048_v40  ;;  %2798 = vmatprep.mubr.bf16.mxu1 %v1462_v44 }
 0x25e   :  { %2784 = vmatprep.subr.bf16.mxu1 %v3049_v43 }
 0x261   :  { %2785 = vmatpush3.bf16.msra.mxu1 %v3049_v43  ;;  %v3074_v43 = vld [vmem:[#allocation9 + $0x10] sm:$0xff]  }
 0x262   :  { %2786 = vmatprep.subr.bf16.mxu1 %v3050_v45 }
 0x265   :  { %2787 = vmatpush3.bf16.msra.mxu1 %v3050_v45 }
 0x266   :  { %2788 = vmatprep.subr.bf16.mxu1 %v3051_v46 }
 0x269   :  { %2789 = vmatpush3.bf16.msra.mxu1 %v3051_v46 }
 0x26a   :  { %2790 = vmatprep.subr.bf16.mxu1 %v3052_v47 }
 0x26d   :  { %2791 = vmatpush3.bf16.msra.mxu1 %v3052_v47  ;;  %v3075_v47 = vld [vmem:[#allocation9 + $0x18] sm:$0xff]  }
 0x26e   :  { %2792 = vmatprep.subr.bf16.mxu1 %v3053_v48 }
 0x271   :  { %2793 = vmatpush3.bf16.msra.mxu1 %v3053_v48  ;;  %v3076_v48 = vld [vmem:[#allocation9 + $0x20] sm:$0xff]  }
 0x272   :  { %2794 = vmatprep.subr.bf16.mxu1 %v3054_v49 }
 0x275   :  { %2795 = vmatpush3.bf16.msra.mxu1 %v3054_v49  ;;  %v3077_v49 = vld [vmem:[#allocation9 + $0x28] sm:$0xff]  }
 0x276   :  { %2796 = vmatprep.subr.bf16.mxu1 %v3055_v50 }
 0x279   :  { %2797 = vmatpush3.bf16.msra.mxu1 %v3055_v50  ;;  %v3078_v50 = vld [vmem:[#allocation9 + $0x30] sm:$0xff]  }
 0x27a   :  { %2802 = vmatprep.subr.bf16.mxu1 %v3056_v51 }
 0x27c   :  { %2799 = vmatmul.mubr.bf16.vlgmr.msra.gmra.mrb[0].mxu1 %v1463_v56 }
 0x27d   :  { %2803 = vmatpush3.bf16.msra.mxu1 %v3056_v51  ;;  %2818 = vmatprep.mubr.bf16.mxu1 %v1586_v58  ;;  %v3079_v51 = vld [vmem:[#allocation9 + $0x38] sm:$0xff]   ;;  %v3082_v58 = vld [vmem:[#allocation9 + $0x88] sm:$0xff]  }
 0x27e   :  { %2804 = vmatprep.subr.bf16.mxu1 %v3057_v57 }
 0x281   :  { %2805 = vmatpush3.bf16.msra.mxu1 %v3057_v57 }
 0x282   :  { %2806 = vmatprep.subr.bf16.mxu1 %v3058_v59 }
 0x285   :  { %2807 = vmatpush3.bf16.msra.mxu1 %v3058_v59 }
 0x286   :  { %2808 = vmatprep.subr.bf16.mxu1 %v3059_v60 }
 0x289   :  { %2809 = vmatpush3.bf16.msra.mxu1 %v3059_v60  ;;  %v3084_v60 = vld [vmem:[#allocation9 + $0x90] sm:$0xff]  }
 0x28a   :  { %2810 = vmatprep.subr.bf16.mxu1 %v3060_v61 }
 0x28d   :  { %2811 = vmatpush3.bf16.msra.mxu1 %v3060_v61  ;;  %v3086_v61 = vld [vmem:[#allocation9 + $0x98] sm:$0xff]  }
 0x28e   :  { %2812 = vmatprep.subr.bf16.mxu1 %v3061_v62 }
 0x291   :  { %2813 = vmatpush3.bf16.msra.mxu1 %v3061_v62  ;;  %v3088_v62 = vld [vmem:[#allocation9 + $0xa0] sm:$0xff]  }
 0x292   :  { %2814 = vmatprep.subr.bf16.mxu1 %v3062_v63 }
 0x295   :  { %2815 = vmatpush3.bf16.msra.mxu1 %v3062_v63  ;;  %v3090_v63 = vld [vmem:[#allocation9 + $0xa8] sm:$0xff]  }
 0x296   :  { %2816 = vmatprep.subr.bf16.mxu1 %v3063_v0 }
 0x299   :  { %2817 = vmatpush3.bf16.msra.mxu1 %v3063_v0  ;;  %v3092_v0 = vld [vmem:[#allocation9 + $0xb0] sm:$0xff]  }
 0x29a   :  { %2822 = vmatprep.subr.bf16.mxu1 %v3064_v1 }
 0x29c   :  { %2819 = vmatmul.mubr.bf16.vlgmr.msra.gmra.mrb[0].mxu1 %v1587_v4 }
 0x29d   :  { %2823 = vmatpush3.bf16.msra.mxu1 %v3064_v1  ;;  %v3094_v1 = vld [vmem:[#allocation9 + $0xb8] sm:$0xff]  }
 0x29e   :  { %2824 = vmatprep.subr.bf16.mxu1 %v3065_v5 }
 0x2a1   :  { %2825 = vmatpush3.bf16.msra.mxu1 %v3065_v5 }
 0x2a2   :  { %2826 = vmatprep.subr.bf16.mxu1 %v3066_v6 }
 0x2a5   :  { %2827 = vmatpush3.bf16.msra.mxu1 %v3066_v6 }
 0x2a6   :  { %2828 = vmatprep.subr.bf16.mxu1 %v3067_v7 }
 0x2a9   :  { %2829 = vmatpush3.bf16.msra.mxu1 %v3067_v7 }
 0x2aa   :  { %2830 = vmatprep.subr.bf16.mxu1 %v3068_v8 }
 0x2ad   :  { %2831 = vmatpush3.bf16.msra.mxu1 %v3068_v8 }
 0x2ae   :  { %2832 = vmatprep.subr.bf16.mxu1 %v3069_v9 }
 0x2b1   :  { %2833 = vmatpush3.bf16.msra.mxu1 %v3069_v9  ;;  %v2382_v9 = vld [vmem:[%s3343_s6] ss:$0 sm:$0xff] }
 0x2b2   :  { %2834 = vmatprep.subr.bf16.mxu1 %v3070_v10 }
 0x2b5   :  { %2835 = vmatpush3.bf16.msra.mxu1 %v3070_v10 }
 0x2b6   :  { %2836 = vmatprep.subr.bf16.mxu1 %v3071_v11 }
 0x2b9   :  { %2837 = vmatpush3.bf16.msra.mxu1 %v3071_v11 }
 0x2ba   :  { %2842 = vmatprep.subr.bf16.mxu1 %v3072_v12 }
 0x30d   :  { %v2900_v5 = vpop.f32.mrb[4].mxu0 }
 0x30e   :  { %v2211_v6 = vpop.f32.mrb[5].mxu0 }
 0x30f   :  { %v2901_v7 = vpop.f32.mrb[6].mxu0 }
 0x310   :  { %v2214_v8 = vpop.f32.mrb[7].mxu0 }
 0x36f   :  { %v2820_v28 = vpop.f32.mrb[0].mxu1 }
 0x370   :  { %v1715_v29 = vadd.f32 %v2820_v28, %v2357_v27  ;;  %v1687_v30 = vpop.f32.mrb[1].mxu1 }
 0x371   :  { %v1713_v31 = vadd.f32 %v2357_v27, %v1687_v30  ;;  %v2821_v32 = vpop.f32.mrb[2].mxu1 }
 0x372   :  { %v1719_v33 = vmax.f32 %v1715_v29, 0.0  ;;  %v1716_v34 = vadd.f32 %v2821_v32, %v2357_v27  ;;  %v1690_v35 = vpop.f32.mrb[3].mxu1 }
 0x373   :  { %v1717_v36 = vmax.f32 %v1713_v31, 0.0  ;;  %v1714_v37 = vadd.f32 %v2357_v27, %v1690_v35 }
 0x374   :  { %1727 = vst [vmem:[#allocation4 + $0x19] sm:$0xff] %v1719_v33  ;;  %v1720_v38 = vmax.f32 %v1716_v34, 0.0 }
 0x375   :  { %1725 = vst [vmem:[#allocation4 + $0x1] sm:$0xff] %v1717_v36  ;;  %v1718_v39 = vmax.f32 %v1714_v37, 0.0 }
 0x376   :  { %1728 = vst [vmem:[#allocation4 + $0x21] sm:$0xff] %v1720_v38  ;;  %v1756_v40 = vpack.c.bf16 %v1720_v38, %v1719_v33 }
 0x377   :  { %1726 = vst [vmem:[#allocation4 + $0x9] sm:$0xff] %v1718_v39  ;;  %v1755_v41 = vpack.c.bf16 %v1718_v39, %v1717_v36 }
 0x379   :  { %2838 = vmatprep.mubr.bf16.mxu1 %v1755_v41 }
 0x37a   :  { %2839 = vmatmul.mubr.bf16.vlgmr.msra.gmra.mrb[4].mxu1 %v1756_v40 }
 0x37b   :  { %2843 = vmatpush3.bf16.msra.mxu1 %v3072_v12  ;;  %v1731_v56 = vld [vmem:[#allocation4 + $0x18] sm:$0xff] }
 0x37c   :  { %2844 = vmatprep.subr.bf16.mxu1 %v3073_v42  ;;  %v1729_v44 = vld [vmem:[#allocation4] sm:$0xff] }
 0x37d   :  { %v1732_v53 = vld [vmem:[#allocation4 + $0x20] sm:$0xff] }
 0x37e   :  { %v1730_v45 = vld [vmem:[#allocation4 + $0x8] sm:$0xff]  ;;  %v1734_v57 = vpack.c.bf16 %v1732_v53, %v1731_v56  ;;  %v1970_v2 = vld [vmem:[#allocation4 + $0x1a] sm:$0xff] }
 0x37f   :  { %v1733_v46 = vpack.c.bf16 %v1730_v45, %v1729_v44  ;;  %2845 = vmatpush3.bf16.msra.mxu1 %v3073_v42  ;;  %v1968_v54 = vld [vmem:[#allocation4 + $0x2] sm:$0xff]  ;;  %v1969_v55 = vld [vmem:[#allocation4 + $0xa] sm:$0xff] }
 0x380   :  { %2846 = vmatprep.subr.bf16.mxu1 %v3074_v43  ;;  %v1972_v59 = vpack.c.bf16 %v1969_v55, %v1968_v54  ;;  %v1971_v3 = vld [vmem:[#allocation4 + $0x22] sm:$0xff] }
 0x381   :  { %2858 = vmatprep.mubr.bf16.mxu1 %v1733_v46  ;;  %v1973_v4 = vpack.c.bf16 %v1971_v3, %v1970_v2 }
 0x383   :  { %2847 = vmatpush3.bf16.msra.mxu1 %v3074_v43 }
 0x384   :  { %2848 = vmatprep.subr.bf16.mxu1 %v3075_v47 }
 0x387   :  { %2849 = vmatpush3.bf16.msra.mxu1 %v3075_v47 }
 0x388   :  { %2850 = vmatprep.subr.bf16.mxu1 %v3076_v48 }
 0x38b   :  { %2851 = vmatpush3.bf16.msra.mxu1 %v3076_v48 }
 0x38c   :  { %2852 = vmatprep.subr.bf16.mxu1 %v3077_v49 }
 0x38f   :  { %2853 = vmatpush3.bf16.msra.mxu1 %v3077_v49 }
 0x390   :  { %2854 = vmatprep.subr.bf16.mxu1 %v3078_v50 }
 0x393   :  { %2855 = vmatpush3.bf16.msra.mxu1 %v3078_v50 }
 0x394   :  { %2856 = vmatprep.subr.bf16.mxu1 %v3079_v51 }
 0x397   :  { %2857 = vmatpush3.bf16.msra.mxu1 %v3079_v51 }
 0x398   :  { %2862 = vmatprep.subr.bf16.mxu1 %v3080_v52 }
 0x39a   :  { %2859 = vmatmul.mubr.bf16.vlgmr.msra.gmra.mrb[4].mxu1 %v1734_v57 }
 0x39b   :  { %2863 = vmatpush3.bf16.msra.mxu1 %v3080_v52  ;;  %2878 = vmatprep.mubr.bf16.mxu1 %v1972_v59 }
 0x39c   :  { %2864 = vmatprep.subr.bf16.mxu1 %v3082_v58 }
 0x39f   :  { %2865 = vmatpush3.bf16.msra.mxu1 %v3082_v58 }
 0x3a0   :  { %2866 = vmatprep.subr.bf16.mxu1 %v3084_v60 }
 0x3a3   :  { %2867 = vmatpush3.bf16.msra.mxu1 %v3084_v60 }
 0x3a4   :  { %2868 = vmatprep.subr.bf16.mxu1 %v3086_v61 }
 0x3a7   :  { %2869 = vmatpush3.bf16.msra.mxu1 %v3086_v61 }
 0x3a8   :  { %2870 = vmatprep.subr.bf16.mxu1 %v3088_v62 }
 0x3ab   :  { %2871 = vmatpush3.bf16.msra.mxu1 %v3088_v62 }
 0x3ac   :  { %2872 = vmatprep.subr.bf16.mxu1 %v3090_v63 }
 0x3af   :  { %2873 = vmatpush3.bf16.msra.mxu1 %v3090_v63 }
 0x3b0   :  { %2874 = vmatprep.subr.bf16.mxu1 %v3092_v0 }
 0x3b3   :  { %2875 = vmatpush3.bf16.msra.mxu1 %v3092_v0 }
 0x3b4   :  { %2876 = vmatprep.subr.bf16.mxu1 %v3094_v1 }
 0x3b7   :  { %2877 = vmatpush3.bf16.msra.mxu1 %v3094_v1 }
 0x3ba   :  { %2879 = vmatmul.mubr.bf16.vlgmr.msra.gmra.mrb[4].mxu1 %v1973_v4 }
 0x48d   :  { %v2880_v10 = vpop.f32.mrb[4].mxu1 }
 0x48e   :  { %v2101_v11 = vadd.f32 %v2880_v10, %v2382_v9  ;;  %v2073_v12 = vpop.f32.mrb[5].mxu1 }
 0x48f   :  { %v2099_v13 = vadd.f32 %v2382_v9, %v2073_v12  ;;  %v2881_v14 = vpop.f32.mrb[6].mxu1 }
 0x490   :  { %v2105_v15 = vmax.f32 %v2101_v11, 0.0  ;;  %v2102_v16 = vadd.f32 %v2881_v14, %v2382_v9  ;;  %v2076_v17 = vpop.f32.mrb[7].mxu1 }
 0x491   :  { %v2103_v18 = vmax.f32 %v2099_v13, 0.0  ;;  %v2100_v20 = vadd.f32 %v2382_v9, %v2076_v17 }
 0x492   :  { %v2228_v21 = vadd.f32 %v2900_v5, %v2105_v15  ;;  %v2106_v22 = vmax.f32 %v2102_v16, 0.0 }
 0x493   :  { %v2226_v23 = vadd.f32 %v2211_v6, %v2103_v18  ;;  %v2104_v24 = vmax.f32 %v2100_v20, 0.0 }
 0x494   :  { %v2239_v25 = vadd.f32 %v2391_v19, %v2228_v21  ;;  %v2229_v26 = vadd.f32 %v2901_v7, %v2106_v22 }
 0x495   :  { %v2237_v27 = vadd.f32 %v2391_v19, %v2226_v23  ;;  %v2227_v28 = vadd.f32 %v2214_v8, %v2104_v24 }
 0x496   :  { %2244 = vst.msk [vmem:[%s3346_s9 + $0x10] sm:$0xff] %vm2241_vm1, %v2239_v25  ;;  %v2240_v29 = vadd.f32 %v2391_v19, %v2229_v26 }
 0x497   :  { %2242 = vst.msk [vmem:[%s3346_s9] sm:$0xff] %vm2241_vm1, %v2237_v27  ;;  %v2238_v30 = vadd.f32 %v2391_v19, %v2227_v28 }
 0x498   :  { %2245 = vst.msk [vmem:[%s3346_s9 + $0x18] sm:$0xff] %vm2241_vm1, %v2240_v29 }
 0x499   :  { %2243 = vst.msk [vmem:[%s3346_s9 + $0x8] sm:$0xff] %vm2241_vm1, %v2238_v30 }
 0x49a   :  { %2250 = vsyncpa [#allocation6], 1 }
 0x49b   :  { %2251 = vsyncpa [#allocation8], 1 }

</bundles_post_ra>
